<compile_context>
chip_gen: v6e
topology: v6e:2x2x1
jax: 0.10.0
libtpu: 0.0.40
codegen_flags: <defaults>
</compile_context>

<pallas_src>
import jax
import jax.numpy as jnp
from jax.experimental import pallas as pl
from jax.experimental.pallas import tpu as pltpu

LANE = 128  # TPU lane width; feature dims / node tiles padded to a multiple of this.


def _round_up(x, m):
    return ((x + m - 1) // m) * m


def _device_kind():
    try:
        return jax.devices()[0].device_kind.lower()
    except Exception:  # pragma: no cover - defensive; fall back to portable dtype
        return ""


def _pick_adj_dtype():
    # v5e/v6e: int8 adjacency halves HBM traffic and the MXU has a native int path.
    # v7x / unknown: keep bf16 (no integer MXU path; fp8 only if multiplicity <= 16).
    kind = _device_kind()
    if "v5" in kind or "v6" in kind:
        return jnp.int8
    return jnp.bfloat16


def _pick_tiling(num_nodes, adj_itemsize, *, max_tile=512,
                 resident_budget=16 << 20, force_tile=None):
    """Returns (tile_n, n_pad). One resident adj block when it fits, else streamed tiles."""
    if force_tile is not None:
        return force_tile, _round_up(num_nodes, force_tile)
    n128 = _round_up(num_nodes, LANE)
    if n128 * n128 * adj_itemsize <= resident_budget:
        return n128, n128                       # constant index map -> adj resident
    return max_tile, _round_up(num_nodes, max_tile)


def _pick_vmem_limit(n_pad, f_pad, tile_n, adj_itemsize):
    needed = (n_pad * f_pad * 2                      # h_cur (bf16, resident)
              + n_pad * f_pad * 4                    # h2_buf (f32, current layer pre-BN)
              + tile_n * f_pad * 4                   # aggregation accumulator
              + 2 * tile_n * tile_n * adj_itemsize   # adj window (double-buffered)
              + 2 * 2 * f_pad * f_pad * 2            # w1/w2 windows (bf16, double-buffered)
              + 2 * 4 * f_pad * 4)                   # packed bias/BN vector window
    needed = int(needed * 1.25) + (2 << 20)          # compiler-internal scratch margin
    ceiling = 100 * 1024 * 1024
    if "v7" in _device_kind():
        ceiling = 56 * 1024 * 1024                   # v7x: 64 MiB physical per core
    return min(max(32 * 1024 * 1024, needed), ceiling)


# ----------------------------------------------------------------------------
# Fused multi-layer GIN kernel.  grid = (layer, dst_block, src_block).
# ----------------------------------------------------------------------------
def make_fused_gin_kernel(num_layer, n_nodes, tile_n, eps=0.0, bn_eps=1e-5):
    def kernel(h0_hbm, adj_ref, w1_ref, w2_ref, vec_ref, out_hbm,
               h_cur, h2_buf, agg_acc, sum_acc, sqsum_acc, dma_sem):
        l = pl.program_id(0)
        d = pl.program_id(1)
        s = pl.program_id(2)
        n_dst = pl.num_programs(1)
        n_src = pl.num_programs(2)

        # One-time: DMA the (bf16, padded) encoded node features into the resident buffer.
        @pl.when((l == 0) & (d == 0) & (s == 0))
        def _():
            cp = pltpu.make_async_copy(h0_hbm, h_cur, dma_sem)
            cp.start()
            cp.wait()

        # Per-layer init of the BatchNorm statistics accumulators.
        @pl.when((d == 0) & (s == 0))
        def _():
            sum_acc[...] = jnp.zeros_like(sum_acc)
            sqsum_acc[...] = jnp.zeros_like(sqsum_acc)

        # Partial neighborhood sum: agg[dst_blk] += A[dst_blk, src_blk] @ H[src_blk].
        src_off = pl.multiple_of(s * tile_n, tile_n)
        h_src = h_cur[pl.ds(src_off, tile_n), :]            # bf16 MXU operand, no re-cast
        a = adj_ref[...]
        if a.dtype != jnp.bfloat16:                          # int8 adjacency (v5e/v6e)
            a = a.astype(jnp.float32).astype(jnp.bfloat16)   # exact for counts <= 127
        part = jnp.dot(a, h_src, preferred_element_type=jnp.float32)

        @pl.when(s == 0)
        def _():
            agg_acc[...] = part           # first src block: plain write (no zero + RMW)

        @pl.when(s > 0)
        def _():
            agg_acc[...] += part

        # After the last src block: finish this dst block's GIN MLP (pre-BN) + stats.
        @pl.when(s == n_src - 1)
        def _():
            dst_off = pl.multiple_of(d * tile_n, tile_n)
            h_dst = h_cur[pl.ds(dst_off, tile_n), :].astype(jnp.float32)
            if eps == 0.0:
                z = h_dst + agg_acc[...]
            else:
                z = (1.0 + eps) * h_dst + agg_acc[...]

            vecs = vec_ref[0]             # (4, f_pad) f32: [b1, b2, gamma, beta]
            h1 = jnp.dot(z.astype(jnp.bfloat16), w1_ref[0],
                         preferred_element_type=jnp.float32) + vecs[0:1, :]
            h1 = jnp.maximum(h1, 0.0)
            h2 = jnp.dot(h1.astype(jnp.bfloat16), w2_ref[0],
                         preferred_element_type=jnp.float32) + vecs[1:2, :]
            h2_buf[pl.ds(dst_off, tile_n), :] = h2

            # BatchNorm statistics; mask only the (single) partial dst block.
            @pl.when(dst_off + tile_n <= n_nodes)
            def _():
                sum_acc[...] += jnp.sum(h2, axis=0, keepdims=True)
                sqsum_acc[...] += jnp.sum(h2 * h2, axis=0, keepdims=True)

            @pl.when(dst_off + tile_n > n_nodes)
            def _():
                row = jax.lax.broadcasted_iota(jnp.int32, (tile_n, 1), 0) + dst_off
                h2m = jnp.where(row < n_nodes, h2, 0.0)
                sum_acc[...] += jnp.sum(h2m, axis=0, keepdims=True)
                sqsum_acc[...] += jnp.sum(h2m * h2m, axis=0, keepdims=True)

        # After the last dst block: finalize BatchNorm, (ReLU), write back / write out.
        @pl.when((d == n_dst - 1) & (s == n_src - 1))
        def _():
            vecs = vec_ref[0]
            inv_n = 1.0 / float(n_nodes)
            mean = sum_acc[...] * inv_n
            # TODO(synk): E[x^2]-E[x]^2 cancels catastrophically for very large
            # activations; switch to a shifted two-pass formulation if that regime shows.
            var = jnp.maximum(sqsum_acc[...] * inv_n - mean * mean, 0.0)
            scale = vecs[2:3, :] * jax.lax.rsqrt(var + bn_eps)
            shift = vecs[3:4, :] - mean * scale
            hn = h2_buf[...] * scale + shift                 # f32, whole padded array

            @pl.when(l < num_layer - 1)
            def _():
                h_cur[...] = jnp.maximum(hn, 0.0).astype(jnp.bfloat16)

            @pl.when(l == num_layer - 1)
            def _():
                h2_buf[...] = hn
                cp = pltpu.make_async_copy(h2_buf, out_hbm, dma_sem)
                cp.start()
                cp.wait()

    return kernel


def gin_forward_pallas(h0, adj, w1s, w2s, vecs, *, num_layer, n_nodes, tile_n,
                       eps=0.0, vmem_limit_bytes=64 << 20):
    n_pad, f_pad = h0.shape
    assert n_pad % tile_n == 0
    n_blocks = n_pad // tile_n
    kernel = make_fused_gin_kernel(num_layer, n_nodes, tile_n, eps=eps)
    per_layer = lambda l, d, s: (l, 0, 0)    # streamed once per layer

    return pl.pallas_call(
        kernel,
        out_shape=jax.ShapeDtypeStruct((n_pad, f_pad), jnp.float32),
        grid_spec=pltpu.PrefetchScalarGridSpec(
            num_scalar_prefetch=0,
            grid=(num_layer, n_blocks, n_blocks),
            in_specs=[
                pl.BlockSpec(memory_space=pl.ANY),                        # h0 (bf16, HBM)
                pl.BlockSpec((tile_n, tile_n), lambda l, d, s: (d, s)),   # adj tiles
                pl.BlockSpec((1, f_pad, f_pad), per_layer),               # w1 (bf16)
                pl.BlockSpec((1, f_pad, f_pad), per_layer),               # w2 (bf16)
                pl.BlockSpec((1, 4, f_pad), per_layer),                   # [b1,b2,gamma,beta]
            ],
            out_specs=pl.BlockSpec(memory_space=pl.ANY),                  # filled by manual DMA
            scratch_shapes=[
                pltpu.VMEM((n_pad, f_pad), jnp.bfloat16),   # h, resident across layers (bf16)
                pltpu.VMEM((n_pad, f_pad), jnp.float32),    # pre-BN h2 of current layer
                pltpu.VMEM((tile_n, f_pad), jnp.float32),   # aggregation accumulator
                pltpu.VMEM((1, f_pad), jnp.float32),        # BN sum
                pltpu.VMEM((1, f_pad), jnp.float32),        # BN sum of squares
                pltpu.SemaphoreType.DMA(()),                # h0-in / result-out copies
            ],
        ),
        compiler_params=pltpu.CompilerParams(
            # Cross-block deps flow through VMEM scratch (resident h, BN stats), so all
            # grid axes run sequentially on one core.
            # TODO(synk): v7x megacore — shard dst blocks over the 2 TCs with a two-phase
            # BatchNorm (per-core partial sums + tiny cross-core reduce in VMEM_SHARED).
            dimension_semantics=("arbitrary", "arbitrary", "arbitrary"),
            vmem_limit_bytes=vmem_limit_bytes,
        ),
    )(h0, adj, w1s, w2s, vecs)


# ----------------------------------------------------------------------------
# Parameter initialization (deterministic, shapes from the module __init__).
# ----------------------------------------------------------------------------
def init_linear(key, fan_in, fan_out):
    # PyTorch nn.Linear default init: U(-1/sqrt(fan_in), 1/sqrt(fan_in)).
    bound = 1.0 / (fan_in ** 0.5)
    kw, kb = jax.random.split(key)
    # Stored transposed to [fan_in, fan_out] so the kernel does x @ W.
    w = jax.random.uniform(kw, (fan_in, fan_out), jnp.float32, -bound, bound)
    b = jax.random.uniform(kb, (1, fan_out), jnp.float32, -bound, bound)
    return w, b


def init_params(key, num_layer, input_dim, emb_dim, num_node_types, max_inv):
    keys = jax.random.split(key, 2 + 2 * num_layer)
    params = {
        "emb_type": jax.random.normal(keys[0], (num_node_types, input_dim), jnp.float32),
        "emb_inv": jax.random.normal(keys[1], (max_inv, input_dim), jnp.float32),
        "layers": [],
    }
    for layer in range(num_layer):
        in_dim = input_dim if layer == 0 else emb_dim
        w1, b1 = init_linear(keys[2 + 2 * layer], in_dim, emb_dim)
        w2, b2 = init_linear(keys[3 + 2 * layer], emb_dim, emb_dim)
        params["layers"].append({
            "w1": w1, "b1": b1, "w2": w2, "b2": b2,
            "gamma": jnp.ones((1, emb_dim), jnp.float32),   # fresh BatchNorm1d
            "beta": jnp.zeros((1, emb_dim), jnp.float32),
        })
    return params


# ----------------------------------------------------------------------------
# Forward pass: glue (embedding, adjacency, padding) in JAX; hot path in Pallas.
# ----------------------------------------------------------------------------
def gnn_node_forward(params, node_type, num_inverted_predecessors, edge_index,
                     num_nodes, num_layer, *, eps=0.0, adj_dtype=None, force_tile=None):
    input_dim = params["emb_type"].shape[1]
    emb_dim = params["layers"][0]["w2"].shape[1]
    f_pad = _round_up(max(input_dim, emb_dim), LANE)

    if adj_dtype is None:
        adj_dtype = _pick_adj_dtype()
    adj_itemsize = jnp.dtype(adj_dtype).itemsize
    tile_n, n_pad = _pick_tiling(num_nodes, adj_itemsize, force_tile=force_tile)

    # node encoder: h0 = Emb(node_type) + Emb(num_inverted_predecessors); bf16-resident.
    h0 = (params["emb_type"][node_type]
          + params["emb_inv"][num_inverted_predecessors]).astype(jnp.float32)
    h0p = (jnp.zeros((n_pad, f_pad), jnp.float32)
           .at[:num_nodes, :input_dim].set(h0)).astype(jnp.bfloat16)

    # Dense adjacency A[dst, src] (multi-edges accumulate) so A @ H is the PyG
    # "source_to_target" sum aggregation.
    # TODO(synk): for truly sparse graphs (E << N^2) replace the dense tiled A @ H with a
    # scalar-prefetch CSR gather / segment-sum kernel; dense is O(L * N^2) HBM bytes.
    src, dst = edge_index[0], edge_index[1]
    counts = jnp.zeros((n_pad, n_pad), jnp.int32).at[dst, src].add(1)
    max_mult = int(jnp.max(counts))
    if adj_dtype == jnp.int8 and max_mult > 127:
        adj_dtype = jnp.bfloat16                     # int8 would overflow; bf16 exact < 256
        adj_itemsize = 2
    assert max_mult < 256, (
        f"edge multiplicity {max_mult} too large for an exact low-precision adjacency")
    adj = counts.astype(adj_dtype)

    def pad_mat(w):
        return jnp.zeros((f_pad, f_pad), jnp.float32).at[:w.shape[0], :w.shape[1]].set(w)

    def pad_vec(v):
        return jnp.zeros((f_pad,), jnp.float32).at[:v.shape[-1]].set(v.reshape(-1))

    layers = params["layers"]
    w1s = jnp.stack([pad_mat(lp["w1"]) for lp in layers]).astype(jnp.bfloat16)
    w2s = jnp.stack([pad_mat(lp["w2"]) for lp in layers]).astype(jnp.bfloat16)
    vecs = jnp.stack([jnp.stack([pad_vec(lp["b1"]), pad_vec(lp["b2"]),
                                 pad_vec(lp["gamma"]), pad_vec(lp["beta"])])
                      for lp in layers])                       # (L, 4, f_pad) f32

    vmem_limit = _pick_vmem_limit(n_pad, f_pad, tile_n, adj_itemsize)
    hp = gin_forward_pallas(h0p, adj, w1s, w2s, vecs,
                            num_layer=num_layer, n_nodes=num_nodes, tile_n=tile_n,
                            eps=eps, vmem_limit_bytes=vmem_limit)
    return hp[:num_nodes, :emb_dim]


# Pure-JAX reference with identical bf16 rounding points (for correctness check).
def gnn_node_reference(params, node_type, num_inverted_predecessors, edge_index,
                       num_nodes, num_layer, eps=0.0, bn_eps=1e-5):
    h = (params["emb_type"][node_type]
         + params["emb_inv"][num_inverted_predecessors]).astype(jnp.float32)
    src, dst = edge_index[0], edge_index[1]
    adj = (jnp.zeros((num_nodes, num_nodes), jnp.float32)
           .at[dst, src].add(1.0)).astype(jnp.bfloat16)
    hb = h.astype(jnp.bfloat16)           # matches the kernel's bf16-resident H
    out = None
    for layer in range(num_layer):
        lp = params["layers"][layer]
        agg = jnp.dot(adj, hb, preferred_element_type=jnp.float32)
        z = (1.0 + eps) * hb.astype(jnp.float32) + agg
        h1 = jnp.maximum(
            jnp.dot(z.astype(jnp.bfloat16), lp["w1"].astype(jnp.bfloat16),
                    preferred_element_type=jnp.float32) + lp["b1"], 0.0)
        h2 = jnp.dot(h1.astype(jnp.bfloat16), lp["w2"].astype(jnp.bfloat16),
                     preferred_element_type=jnp.float32) + lp["b2"]
        mean = jnp.mean(h2, axis=0, keepdims=True)
        var = jnp.maximum(jnp.mean(h2 * h2, axis=0, keepdims=True) - mean * mean, 0.0)
        hn = (h2 - mean) * jax.lax.rsqrt(var + bn_eps) * lp["gamma"] + lp["beta"]
        out = hn
        if layer != num_layer - 1:
            hb = jnp.maximum(hn, 0.0).astype(jnp.bfloat16)
    return out


if __name__ == "__main__":
    key = jax.random.PRNGKey(0)
    k_nt, k_ni, k_src, k_dst, k_params = jax.random.split(key, 5)

    # Small synthetic graph consistent with the module's inputs.
    N = 200            # number of nodes
    E = 512            # number of directed edges
    NUM_LAYER = 3
    INPUT_DIM = 16     # padded to 128 lanes inside the wrapper
    EMB_DIM = 32       # padded to 128 lanes inside the wrapper
    NUM_NODE_TYPES = 4
    MAX_INV = 3

    node_type = jax.random.randint(k_nt, (N,), 0, NUM_NODE_TYPES)
    num_inv = jax.random.randint(k_ni, (N,), 0, MAX_INV)
    edge_index = jnp.stack([
        jax.random.randint(k_src, (E,), 0, N),
        jax.random.randint(k_dst, (E,), 0, N),
    ])  # [2, E]

    params = init_params(k_params, NUM_LAYER, INPUT_DIM, EMB_DIM,
                         NUM_NODE_TYPES, MAX_INV)

    h_ref = gnn_node_reference(params, node_type, num_inv, edge_index, N, NUM_LAYER)

    # 1) Default auto tiling: the padded 256x256 adjacency fits the residency budget,
    #    so it runs as a single resident adjacency block reused by every layer.
    h_out = gnn_node_forward(params, node_type, num_inv, edge_index, N, NUM_LAYER)
    h_out = jax.block_until_ready(h_out)
    assert h_out.shape == (N, EMB_DIM)
    assert bool(jnp.all(jnp.isfinite(h_out)))
    err = float(jnp.max(jnp.abs(h_out - h_ref)))
    assert err < 5e-2, f"auto-tiled kernel max abs error vs reference: {err}"

    # 2) Forced 128-row tiles: exercises the streamed multi-block (dst, src) grid, the
    #    cross-block aggregation accumulator and the partial-block BatchNorm mask.
    h_out2 = gnn_node_forward(params, node_type, num_inv, edge_index, N, NUM_LAYER,
                              force_tile=128)
    h_out2 = jax.block_until_ready(h_out2)
    err2 = float(jnp.max(jnp.abs(h_out2 - h_ref)))
    assert err2 < 5e-2, f"tiled kernel max abs error vs reference: {err2}"

    print("KERNEL_OK")
</pallas_src>

<mosaic_0001>
module attributes {stable_mosaic.version = 11 : i64} {
  func.func @kernel(%arg0: i32, %arg1: i32, %arg2: i32, %arg3: memref<256x128xbf16, #tpu.memory_space<any>>, %arg4: memref<256x256xbf16, #tpu.memory_space<vmem>>, %arg5: memref<1x128x128xbf16, #tpu.memory_space<vmem>>, %arg6: memref<1x128x128xbf16, #tpu.memory_space<vmem>>, %arg7: memref<1x4x128xf32, #tpu.memory_space<vmem>>, %arg8: memref<256x128xf32, #tpu.memory_space<any>>, %arg9: memref<256x128xbf16, #tpu.memory_space<vmem>>, %arg10: memref<256x128xf32, #tpu.memory_space<vmem>>, %arg11: memref<256x128xf32, #tpu.memory_space<vmem>>, %arg12: memref<1x128xf32, #tpu.memory_space<vmem>>, %arg13: memref<1x128xf32, #tpu.memory_space<vmem>>, %arg14: memref<!tpu.dma_semaphore, #tpu.memory_space<semaphore_mem>>) attributes {dimension_semantics = [#tpu.dimension_semantics<arbitrary>, #tpu.dimension_semantics<arbitrary>, #tpu.dimension_semantics<arbitrary>], iteration_bounds = array<i64: 3, 1, 1>, scalar_prefetch = 0 : i64, scratch_operands = 6 : i64, tpu.core_type = #tpu.core_type<tc>, window_params = [{}, {transform_indices = @transform_1, window_bounds = array<i64: 256, 256>}, {transform_indices = @transform_2, window_bounds = array<i64: 1, 128, 128>}, {transform_indices = @transform_3, window_bounds = array<i64: 1, 128, 128>}, {transform_indices = @transform_4, window_bounds = array<i64: 1, 4, 128>}, {}]} {
    %c0_i32 = arith.constant 0 : i32
    %0 = arith.cmpi eq, %arg0, %c0_i32 : i32
    %c0_i32_0 = arith.constant 0 : i32
    %1 = arith.cmpi eq, %arg1, %c0_i32_0 : i32
    %2 = arith.andi %0, %1 : i1
    %c0_i32_1 = arith.constant 0 : i32
    %3 = arith.cmpi eq, %arg2, %c0_i32_1 : i32
    %4 = arith.andi %2, %3 : i1
    %5 = arith.extui %4 : i1 to i32
    %c0_i32_2 = arith.constant 0 : i32
    %6 = arith.cmpi ne, %5, %c0_i32_2 : i32
    scf.if %6 {
      tpu.enqueue_dma source(%arg3 : memref<256x128xbf16, #tpu.memory_space<any>>) target(%arg9 : memref<256x128xbf16, #tpu.memory_space<vmem>>) target_semaphore(%arg14 : memref<!tpu.dma_semaphore, #tpu.memory_space<semaphore_mem>>)
      tpu.wait_dma2 semaphore(%arg14 : memref<!tpu.dma_semaphore, #tpu.memory_space<semaphore_mem>>) src(%arg3 : memref<256x128xbf16, #tpu.memory_space<any>>) dst(%arg9 : memref<256x128xbf16, #tpu.memory_space<vmem>>)
    } else {
    }
    %c0_i32_3 = arith.constant 0 : i32
    %7 = arith.cmpi eq, %arg1, %c0_i32_3 : i32
    %c0_i32_4 = arith.constant 0 : i32
    %8 = arith.cmpi eq, %arg2, %c0_i32_4 : i32
    %9 = arith.andi %7, %8 : i1
    %10 = arith.extui %9 : i1 to i32
    %c0_i32_5 = arith.constant 0 : i32
    %11 = arith.cmpi ne, %10, %c0_i32_5 : i32
    scf.if %11 {
      %cst_17 = arith.constant 0.000000e+00 : f32
      %32 = vector.broadcast %cst_17 : f32 to vector<1x128xf32>
      %c0_18 = arith.constant 0 : index
      %c0_19 = arith.constant 0 : index
      %33 = vector.load %arg12[%c0_18, %c0_19] : memref<1x128xf32, #tpu.memory_space<vmem>>, vector<1x128xf32>
      tpu.vector_store %arg12[%c0_18, %c0_19], %32 {strides = array<i32>} : memref<1x128xf32, #tpu.memory_space<vmem>>, vector<1x128xf32>,
      %cst_20 = arith.constant 0.000000e+00 : f32
      %34 = vector.broadcast %cst_20 : f32 to vector<1x128xf32>
      %c0_21 = arith.constant 0 : index
      %c0_22 = arith.constant 0 : index
      %35 = vector.load %arg13[%c0_21, %c0_22] : memref<1x128xf32, #tpu.memory_space<vmem>>, vector<1x128xf32>
      tpu.vector_store %arg13[%c0_21, %c0_22], %34 {strides = array<i32>} : memref<1x128xf32, #tpu.memory_space<vmem>>, vector<1x128xf32>,
    } else {
    }
    %c256_i32 = arith.constant 256 : i32
    %12 = arith.muli %arg2, %c256_i32 : i32
    %13 = tpu.assume_multiple %12, 256 : i32
    %14 = arith.index_cast %13 : i32 to index
    %c0 = arith.constant 0 : index
    %15 = vector.load %arg9[%14, %c0] : memref<256x128xbf16, #tpu.memory_space<vmem>>, vector<256x128xbf16>
    %c0_6 = arith.constant 0 : index
    %c0_7 = arith.constant 0 : index
    %16 = vector.load %arg4[%c0_6, %c0_7] : memref<256x256xbf16, #tpu.memory_space<vmem>>, vector<256x256xbf16>
    %cst = arith.constant dense<0.000000e+00> : vector<256x128xf32>
    %17 = tpu.matmul %16, %15, %cst {dimension_numbers = #tpu.dot_dimension_numbers<[1], [0], [0], [1], [0, 0, 1, 1], [], []>} : vector<256x256xbf16>, vector<256x128xbf16>, vector<256x128xf32> -> vector<256x128xf32>
    %c0_i32_8 = arith.constant 0 : i32
    %18 = arith.cmpi eq, %arg2, %c0_i32_8 : i32
    %19 = arith.extui %18 : i1 to i32
    %c0_i32_9 = arith.constant 0 : i32
    %20 = arith.cmpi ne, %19, %c0_i32_9 : i32
    scf.if %20 {
      %c0_17 = arith.constant 0 : index
      %c0_18 = arith.constant 0 : index
      %32 = vector.load %arg11[%c0_17, %c0_18] : memref<256x128xf32, #tpu.memory_space<vmem>>, vector<256x128xf32>
      tpu.vector_store %arg11[%c0_17, %c0_18], %17 {strides = array<i32>} : memref<256x128xf32, #tpu.memory_space<vmem>>, vector<256x128xf32>,
    } else {
    }
    %c0_i32_10 = arith.constant 0 : i32
    %21 = arith.cmpi sgt, %arg2, %c0_i32_10 : i32
    %22 = arith.extui %21 : i1 to i32
    %c0_i32_11 = arith.constant 0 : i32
    %23 = arith.cmpi ne, %22, %c0_i32_11 : i32
    scf.if %23 {
      %c0_17 = arith.constant 0 : index
      %c0_18 = arith.constant 0 : index
      %32 = vector.load %arg11[%c0_17, %c0_18] : memref<256x128xf32, #tpu.memory_space<vmem>>, vector<256x128xf32>
      %33 = arith.addf %32, %17 : vector<256x128xf32>
      %c0_19 = arith.constant 0 : index
      %c0_20 = arith.constant 0 : index
      %34 = vector.load %arg11[%c0_19, %c0_20] : memref<256x128xf32, #tpu.memory_space<vmem>>, vector<256x128xf32>
      tpu.vector_store %arg11[%c0_19, %c0_20], %33 {strides = array<i32>} : memref<256x128xf32, #tpu.memory_space<vmem>>, vector<256x128xf32>,
    } else {
    }
    %c0_i32_12 = arith.constant 0 : i32
    %24 = arith.cmpi eq, %arg2, %c0_i32_12 : i32
    %25 = arith.extui %24 : i1 to i32
    %c0_i32_13 = arith.constant 0 : i32
    %26 = arith.cmpi ne, %25, %c0_i32_13 : i32
    scf.if %26 {
      %c256_i32_17 = arith.constant 256 : i32
      %32 = arith.muli %arg1, %c256_i32_17 : i32
      %33 = tpu.assume_multiple %32, 256 : i32
      %34 = arith.index_cast %33 : i32 to index
      %c0_18 = arith.constant 0 : index
      %35 = vector.load %arg9[%34, %c0_18] : memref<256x128xbf16, #tpu.memory_space<vmem>>, vector<256x128xbf16>
      %36 = arith.extf %35 : vector<256x128xbf16> to vector<256x128xf32>
      %c0_19 = arith.constant 0 : index
      %c0_20 = arith.constant 0 : index
      %37 = vector.load %arg11[%c0_19, %c0_20] : memref<256x128xf32, #tpu.memory_space<vmem>>, vector<256x128xf32>
      %38 = arith.addf %36, %37 : vector<256x128xf32>
      %c0_21 = arith.constant 0 : index
      %c0_22 = arith.constant 0 : index
      %c0_23 = arith.constant 0 : index
      %39 = vector.load %arg7[%c0_21, %c0_22, %c0_23] : memref<1x4x128xf32, #tpu.memory_space<vmem>>, vector<1x4x128xf32>
      %40 = vector.shape_cast %39 : vector<1x4x128xf32> to vector<4x128xf32>
      %41 = arith.truncf %38 : vector<256x128xf32> to vector<256x128xbf16>
      %c0_24 = arith.constant 0 : index
      %c0_25 = arith.constant 0 : index
      %c0_26 = arith.constant 0 : index
      %42 = vector.load %arg5[%c0_24, %c0_25, %c0_26] : memref<1x128x128xbf16, #tpu.memory_space<vmem>>, vector<1x128x128xbf16>
      %43 = vector.shape_cast %42 : vector<1x128x128xbf16> to vector<128x128xbf16>
      %cst_27 = arith.constant dense<0.000000e+00> : vector<256x128xf32>
      %44 = tpu.matmul %41, %43, %cst_27 {dimension_numbers = #tpu.dot_dimension_numbers<[1], [0], [0], [1], [0, 0, 1, 1], [], []>} : vector<256x128xbf16>, vector<128x128xbf16>, vector<256x128xf32> -> vector<256x128xf32>
      %45 = vector.extract_strided_slice %40 {offsets = [0, 0], sizes = [1, 128], strides = [1, 1]} : vector<4x128xf32> to vector<1x128xf32>
      %46 = vector.broadcast %45 : vector<1x128xf32> to vector<256x128xf32>
      %47 = arith.addf %44, %46 : vector<256x128xf32>
      %cst_28 = arith.constant 0.000000e+00 : f32
      %48 = vector.broadcast %cst_28 : f32 to vector<256x128xf32>
      %49 = arith.maximumf %47, %48 : vector<256x128xf32>
      %50 = arith.truncf %49 : vector<256x128xf32> to vector<256x128xbf16>
      %c0_29 = arith.constant 0 : index
      %c0_30 = arith.constant 0 : index
      %c0_31 = arith.constant 0 : index
      %51 = vector.load %arg6[%c0_29, %c0_30, %c0_31] : memref<1x128x128xbf16, #tpu.memory_space<vmem>>, vector<1x128x128xbf16>
      %52 = vector.shape_cast %51 : vector<1x128x128xbf16> to vector<128x128xbf16>
      %cst_32 = arith.constant dense<0.000000e+00> : vector<256x128xf32>
      %53 = tpu.matmul %50, %52, %cst_32 {dimension_numbers = #tpu.dot_dimension_numbers<[1], [0], [0], [1], [0, 0, 1, 1], [], []>} : vector<256x128xbf16>, vector<128x128xbf16>, vector<256x128xf32> -> vector<256x128xf32>
      %54 = vector.extract_strided_slice %40 {offsets = [1, 0], sizes = [1, 128], strides = [1, 1]} : vector<4x128xf32> to vector<1x128xf32>
      %55 = vector.broadcast %54 : vector<1x128xf32> to vector<256x128xf32>
      %56 = arith.addf %53, %55 : vector<256x128xf32>
      %57 = arith.index_cast %33 : i32 to index
      %c0_33 = arith.constant 0 : index
      %58 = vector.load %arg10[%57, %c0_33] : memref<256x128xf32, #tpu.memory_space<vmem>>, vector<256x128xf32>
      tpu.vector_store %arg10[%57, %c0_33], %56 {strides = array<i32>} : memref<256x128xf32, #tpu.memory_space<vmem>>, vector<256x128xf32>,
      %c256_i32_34 = arith.constant 256 : i32
      %59 = arith.addi %33, %c256_i32_34 : i32
      %c200_i32 = arith.constant 200 : i32
      %60 = arith.cmpi sle, %59, %c200_i32 : i32
      %61 = arith.extui %60 : i1 to i32
      %c0_i32_35 = arith.constant 0 : i32
      %62 = arith.cmpi ne, %61, %c0_i32_35 : i32
      scf.if %62 {
        %c0_39 = arith.constant 0 : index
        %c0_40 = arith.constant 0 : index
        %67 = vector.load %arg12[%c0_39, %c0_40] : memref<1x128xf32, #tpu.memory_space<vmem>>, vector<1x128xf32>
        %cst_41 = arith.constant dense<0.000000e+00> : vector<128xf32>
        %68 = vector.multi_reduction <add>, %56, %cst_41 [0] : vector<256x128xf32> to vector<128xf32>
        %69 = vector.shape_cast %68 : vector<128xf32> to vector<1x128xf32>
        %70 = arith.addf %67, %69 : vector<1x128xf32>
        %c0_42 = arith.constant 0 : index
        %c0_43 = arith.constant 0 : index
        %71 = vector.load %arg12[%c0_42, %c0_43] : memref<1x128xf32, #tpu.memory_space<vmem>>, vector<1x128xf32>
        tpu.vector_store %arg12[%c0_42, %c0_43], %70 {strides = array<i32>} : memref<1x128xf32, #tpu.memory_space<vmem>>, vector<1x128xf32>,
        %c0_44 = arith.constant 0 : index
        %c0_45 = arith.constant 0 : index
        %72 = vector.load %arg13[%c0_44, %c0_45] : memref<1x128xf32, #tpu.memory_space<vmem>>, vector<1x128xf32>
        %73 = arith.mulf %56, %56 : vector<256x128xf32>
        %cst_46 = arith.constant dense<0.000000e+00> : vector<128xf32>
        %74 = vector.multi_reduction <add>, %73, %cst_46 [0] : vector<256x128xf32> to vector<128xf32>
        %75 = vector.shape_cast %74 : vector<128xf32> to vector<1x128xf32>
        %76 = arith.addf %72, %75 : vector<1x128xf32>
        %c0_47 = arith.constant 0 : index
        %c0_48 = arith.constant 0 : index
        %77 = vector.load %arg13[%c0_47, %c0_48] : memref<1x128xf32, #tpu.memory_space<vmem>>, vector<1x128xf32>
        tpu.vector_store %arg13[%c0_47, %c0_48], %76 {strides = array<i32>} : memref<1x128xf32, #tpu.memory_space<vmem>>, vector<1x128xf32>,
      } else {
      }
      %c256_i32_36 = arith.constant 256 : i32
      %63 = arith.addi %33, %c256_i32_36 : i32
      %c200_i32_37 = arith.constant 200 : i32
      %64 = arith.cmpi sgt, %63, %c200_i32_37 : i32
      %65 = arith.extui %64 : i1 to i32
      %c0_i32_38 = arith.constant 0 : i32
      %66 = arith.cmpi ne, %65, %c0_i32_38 : i32
      scf.if %66 {
        %67 = tpu.iota {dimensions = array<i32: 0>} : vector<256x1xi32>
        %68 = vector.broadcast %33 : i32 to vector<256x1xi32>
        %69 = arith.addi %67, %68 : vector<256x1xi32>
        %c200_i32_39 = arith.constant 200 : i32
        %70 = vector.broadcast %c200_i32_39 : i32 to vector<256x1xi32>
        %71 = arith.cmpi slt, %69, %70 : vector<256x1xi32>
        %cst_40 = arith.constant 0.000000e+00 : f32
        %72 = vector.shape_cast %71 : vector<256x1xi1> to vector<256x1xi1>
        %73 = vector.broadcast %72 : vector<256x1xi1> to vector<256x128xi1>
        %74 = vector.broadcast %cst_40 : f32 to vector<256x128xf32>
        %75 = arith.select %73, %56, %74 : vector<256x128xi1>, vector<256x128xf32>
        %c0_41 = arith.constant 0 : index
        %c0_42 = arith.constant 0 : index
        %76 = vector.load %arg12[%c0_41, %c0_42] : memref<1x128xf32, #tpu.memory_space<vmem>>, vector<1x128xf32>
        %cst_43 = arith.constant dense<0.000000e+00> : vector<128xf32>
        %77 = vector.multi_reduction <add>, %75, %cst_43 [0] : vector<256x128xf32> to vector<128xf32>
        %78 = vector.shape_cast %77 : vector<128xf32> to vector<1x128xf32>
        %79 = arith.addf %76, %78 : vector<1x128xf32>
        %c0_44 = arith.constant 0 : index
        %c0_45 = arith.constant 0 : index
        %80 = vector.load %arg12[%c0_44, %c0_45] : memref<1x128xf32, #tpu.memory_space<vmem>>, vector<1x128xf32>
        tpu.vector_store %arg12[%c0_44, %c0_45], %79 {strides = array<i32>} : memref<1x128xf32, #tpu.memory_space<vmem>>, vector<1x128xf32>,
        %c0_46 = arith.constant 0 : index
        %c0_47 = arith.constant 0 : index
        %81 = vector.load %arg13[%c0_46, %c0_47] : memref<1x128xf32, #tpu.memory_space<vmem>>, vector<1x128xf32>
        %82 = arith.mulf %75, %75 : vector<256x128xf32>
        %cst_48 = arith.constant dense<0.000000e+00> : vector<128xf32>
        %83 = vector.multi_reduction <add>, %82, %cst_48 [0] : vector<256x128xf32> to vector<128xf32>
        %84 = vector.shape_cast %83 : vector<128xf32> to vector<1x128xf32>
        %85 = arith.addf %81, %84 : vector<1x128xf32>
        %c0_49 = arith.constant 0 : index
        %c0_50 = arith.constant 0 : index
        %86 = vector.load %arg13[%c0_49, %c0_50] : memref<1x128xf32, #tpu.memory_space<vmem>>, vector<1x128xf32>
        tpu.vector_store %arg13[%c0_49, %c0_50], %85 {strides = array<i32>} : memref<1x128xf32, #tpu.memory_space<vmem>>, vector<1x128xf32>,
      } else {
      }
    } else {
    }
    %c0_i32_14 = arith.constant 0 : i32
    %27 = arith.cmpi eq, %arg1, %c0_i32_14 : i32
    %c0_i32_15 = arith.constant 0 : i32
    %28 = arith.cmpi eq, %arg2, %c0_i32_15 : i32
    %29 = arith.andi %27, %28 : i1
    %30 = arith.extui %29 : i1 to i32
    %c0_i32_16 = arith.constant 0 : i32
    %31 = arith.cmpi ne, %30, %c0_i32_16 : i32
    scf.if %31 {
      %c0_17 = arith.constant 0 : index
      %c0_18 = arith.constant 0 : index
      %c0_19 = arith.constant 0 : index
      %32 = vector.load %arg7[%c0_17, %c0_18, %c0_19] : memref<1x4x128xf32, #tpu.memory_space<vmem>>, vector<1x4x128xf32>
      %33 = vector.shape_cast %32 : vector<1x4x128xf32> to vector<4x128xf32>
      %c0_20 = arith.constant 0 : index
      %c0_21 = arith.constant 0 : index
      %34 = vector.load %arg12[%c0_20, %c0_21] : memref<1x128xf32, #tpu.memory_space<vmem>>, vector<1x128xf32>
      %cst_22 = arith.constant 5.000000e-03 : f32
      %35 = vector.broadcast %cst_22 : f32 to vector<1x128xf32>
      %36 = arith.mulf %34, %35 : vector<1x128xf32>
      %c0_23 = arith.constant 0 : index
      %c0_24 = arith.constant 0 : index
      %37 = vector.load %arg13[%c0_23, %c0_24] : memref<1x128xf32, #tpu.memory_space<vmem>>, vector<1x128xf32>
      %cst_25 = arith.constant 5.000000e-03 : f32
      %38 = vector.broadcast %cst_25 : f32 to vector<1x128xf32>
      %39 = arith.mulf %37, %38 : vector<1x128xf32>
      %40 = arith.mulf %36, %36 : vector<1x128xf32>
      %41 = arith.subf %39, %40 : vector<1x128xf32>
      %cst_26 = arith.constant 0.000000e+00 : f32
      %42 = vector.broadcast %cst_26 : f32 to vector<1x128xf32>
      %43 = arith.maximumf %41, %42 : vector<1x128xf32>
      %44 = vector.extract_strided_slice %33 {offsets = [2, 0], sizes = [1, 128], strides = [1, 1]} : vector<4x128xf32> to vector<1x128xf32>
      %cst_27 = arith.constant 9.99999974E-6 : f32
      %45 = vector.broadcast %cst_27 : f32 to vector<1x128xf32>
      %46 = arith.addf %43, %45 : vector<1x128xf32>
      %47 = math.rsqrt %46 : vector<1x128xf32>
      %48 = arith.mulf %44, %47 : vector<1x128xf32>
      %49 = vector.extract_strided_slice %33 {offsets = [3, 0], sizes = [1, 128], strides = [1, 1]} : vector<4x128xf32> to vector<1x128xf32>
      %50 = arith.mulf %36, %48 : vector<1x128xf32>
      %51 = arith.subf %49, %50 : vector<1x128xf32>
      %c0_28 = arith.constant 0 : index
      %c0_29 = arith.constant 0 : index
      %52 = vector.load %arg10[%c0_28, %c0_29] : memref<256x128xf32, #tpu.memory_space<vmem>>, vector<256x128xf32>
      %53 = vector.broadcast %48 : vector<1x128xf32> to vector<256x128xf32>
      %54 = arith.mulf %52, %53 : vector<256x128xf32>
      %55 = vector.broadcast %51 : vector<1x128xf32> to vector<256x128xf32>
      %56 = arith.addf %54, %55 : vector<256x128xf32>
      %c2_i32 = arith.constant 2 : i32
      %57 = arith.cmpi slt, %arg0, %c2_i32 : i32
      %58 = arith.extui %57 : i1 to i32
      %c0_i32_30 = arith.constant 0 : i32
      %59 = arith.cmpi ne, %58, %c0_i32_30 : i32
      scf.if %59 {
        %cst_33 = arith.constant 0.000000e+00 : f32
        %63 = vector.broadcast %cst_33 : f32 to vector<256x128xf32>
        %64 = arith.maximumf %56, %63 : vector<256x128xf32>
        %65 = arith.truncf %64 : vector<256x128xf32> to vector<256x128xbf16>
        %c0_34 = arith.constant 0 : index
        %c0_35 = arith.constant 0 : index
        %66 = vector.load %arg9[%c0_34, %c0_35] : memref<256x128xbf16, #tpu.memory_space<vmem>>, vector<256x128xbf16>
        tpu.vector_store %arg9[%c0_34, %c0_35], %65 {strides = array<i32>} : memref<256x128xbf16, #tpu.memory_space<vmem>>, vector<256x128xbf16>,
      } else {
      }
      %c2_i32_31 = arith.constant 2 : i32
      %60 = arith.cmpi eq, %arg0, %c2_i32_31 : i32
      %61 = arith.extui %60 : i1 to i32
      %c0_i32_32 = arith.constant 0 : i32
      %62 = arith.cmpi ne, %61, %c0_i32_32 : i32
      scf.if %62 {
        %c0_33 = arith.constant 0 : index
        %c0_34 = arith.constant 0 : index
        %63 = vector.load %arg10[%c0_33, %c0_34] : memref<256x128xf32, #tpu.memory_space<vmem>>, vector<256x128xf32>
        tpu.vector_store %arg10[%c0_33, %c0_34], %56 {strides = array<i32>} : memref<256x128xf32, #tpu.memory_space<vmem>>, vector<256x128xf32>,
        tpu.enqueue_dma source(%arg10 : memref<256x128xf32, #tpu.memory_space<vmem>>) target(%arg8 : memref<256x128xf32, #tpu.memory_space<any>>) target_semaphore(%arg14 : memref<!tpu.dma_semaphore, #tpu.memory_space<semaphore_mem>>)
        tpu.wait_dma2 semaphore(%arg14 : memref<!tpu.dma_semaphore, #tpu.memory_space<semaphore_mem>>) src(%arg10 : memref<256x128xf32, #tpu.memory_space<vmem>>) dst(%arg8 : memref<256x128xf32, #tpu.memory_space<any>>)
      } else {
      }
    } else {
    }
    return
  }
  func.func @transform_1(%arg0: i32, %arg1: i32, %arg2: i32) -> (i32, i32) {
    %c0_i32 = arith.constant 0 : i32
    return %arg1, %arg2 : i32, i32
  }
  func.func @transform_2(%arg0: i32, %arg1: i32, %arg2: i32) -> (i32, i32, i32) {
    %c0_i32 = arith.constant 0 : i32
    %c0_i32_0 = arith.constant 0 : i32
    %c0_i32_1 = arith.constant 0 : i32
    return %arg0, %c0_i32, %c0_i32_0 : i32, i32, i32
  }
  func.func @transform_3(%arg0: i32, %arg1: i32, %arg2: i32) -> (i32, i32, i32) {
    %c0_i32 = arith.constant 0 : i32
    %c0_i32_0 = arith.constant 0 : i32
    %c0_i32_1 = arith.constant 0 : i32
    return %arg0, %c0_i32, %c0_i32_0 : i32, i32, i32
  }
  func.func @transform_4(%arg0: i32, %arg1: i32, %arg2: i32) -> (i32, i32, i32) {
    %c0_i32 = arith.constant 0 : i32
    %c0_i32_0 = arith.constant 0 : i32
    %c0_i32_1 = arith.constant 0 : i32
    return %arg0, %c0_i32, %c0_i32_0 : i32, i32, i32
  }
}

</mosaic_0001>

<bundles_post_ra>
// kernel: tpu_custom_call.1
= control target key start
LH: loop header
LB: loop body
LE: loop exit
PB: predicated region body
PF: predicated region fallthrough
CT: control target
= control target key end

     0   :  { %s4176_s0 = inlined_call_operand.hbm [shape: bf16[256,128], index: 0, kind: input, shape index: {}]   ;;  %s4177_s1 = inlined_call_operand.hbm [shape: bf16[256,256], index: 1, kind: input, shape index: {}]   ;;  %s4178_s2 = inlined_call_operand.hbm [shape: bf16[3,128,128], index: 2, kind: input, shape index: {}]   ;;  %s4179_s3 = inlined_call_operand.hbm [shape: bf16[3,128,128], index: 3, kind: input, shape index: {}]   ;;  %s4180_s4 = inlined_call_operand.hbm [shape: f32[3,4,128], index: 4, kind: input, shape index: {}]   ;;  %s4181_s5 = inlined_call_operand.hbm [shape: f32[256,128], index: 5, kind: output, shape index: {}]  }
   0x1   :  { %4184 = sst [smem:[#allocation26_spill]] %s4177_s1 }
   0x2   :  { %4185 = sst [smem:[#allocation27_spill]] %s4178_s2 }
   0x3   :  { %10 = vsyncpa [#allocation9], 0 }
   0x4   :  { %11 = vsyncpa [#allocation11], 0 }
   0x5   :  { %13 = vsyncpa [#allocation11 + $0x1], 0 }
   0x6   :  { %14 = vsyncpa [#allocation14], 0 }
   0x7   :  { %16 = vsyncpa [#allocation14 + $0x1], 0  ;;  %s3562_s18 = smov 0   ;;  %s3564_s19 = smov 0  }
   0x8   :  { %s3566_s20 = smov 0   ;;  %s3568_s21 = smov 0  }
   0x9   :  { %s3570_s22 = smov 0   ;;  %s3572_s23 = smov 0  }
   0xa LB: > { %s37_s24 = sadd.s32 1, %s3514_s22  ;;  %s65_s25 = sadd.s32 1, %s3506_s20  ;;  %s3518_s23 = sphi %s3572_s23, %s22_s23   ;;  %s3514_s22 = sphi %s3570_s22, %s4199_s22   ;;  %s3510_s21 = sphi %s3568_s21, %s4198_s21   ;;  %s3506_s20 = sphi %s3566_s20, %s4197_s20   ;;  %s3502_s19 = sphi %s3564_s19, %s4196_s19   ;;  %s3498_s18 = sphi %s3562_s18, %s4195_s18  }
   0xb   : > { %p39_p0 = scmp.ge.s32.totalorder %s37_s24, 3  ;;  %p71_p1 = scmp.ne.s32.totalorder %s3506_s20, %s3502_s19 }
   0xc   : > { %p72_p2 = scmp.eq.s32.totalorder %s3518_s23, 0  ;;  %p3159_p5 = scmp.lt.s32.totalorder %s3518_s23, 3 }
   0xd   : > { %s4201_s24 = smov (%p39_p0, %s37_s24), 0  ;;  %s150_s27 = sand.u32 1, %s3518_s23  }
   0xe   : > { %p73_p4 = por %p72_p2, %p71_p1  ;;  %s62_s26 = ssub.s32 %s3514_s22, %s4201_s24 }
   0xf   : > { %p63_p6 = scmp.eq.s32.totalorder %s62_s26, 0  ;;  %s3605_s28 = sand.u32 1, %s3506_s20  }
  0x10   : > { %s2550_s30 = sshll.u32 %s3605_s28, 6  ;;  %s2665_s6 = sshll.u32 %s3514_s22, 10 }
  0x11   : > { %s3608_s29 = scalar_select %p63_p6, %s3506_s20, %s65_s25  }
  0x12   : > { %s4186_s2 = sld [smem:[#allocation27_spill]]  ;;  %s154_s10 = scalar_lea.vmem [#allocation10], %s2550_s30 }
  0x13   : > { %s161_s11 = sshll.u32 %s154_s10, 4  ;;  %p3617_p7 = pnand %p3159_p5, %p73_p4  ;;  %s162_s11 = int_to_ptr.vmem [resolvable:$true] %s161_s11 }
  0x14   : > { %s3621_s13 = scalar_lea.sflag [#allocation11], %s150_s27  ;;  %s3313_s14 = scalar_lea.vmem %s162_s11, 1024 }
  0x15   : > { %p4182_p8 = pneg %p3617_p7  ;;  %p3314_p9 = scmp.ne.s32.totalorder %s162_s11, %s3313_s14 }
  0x16   : > { %s3520_s15 = smov [#allocation10]  }
  0x17   : > { %p3316_p10 = pnand %p3314_p9, %p4182_p8  ;;  %s3318_s16 = sshll.u32 %s3520_s15, 4  ;;  %s3319_s16 = int_to_ptr.vmem [resolvable:$false] %s3318_s16 }
  0x18   : > { %s160_s9 = scalar_lea.hbm %s4186_s2, %s2665_s6  ;;  %s3320_s17 = scalar_lea.vmem %s3319_s16, 2048 }
  0x19   : > { %p3317_p11 = pneg %p3316_p10  ;;  %p3321_p12 = scmp.lt.s32.totalorder %s162_s11, %s3319_s16 }
  0x1a   : > { %p3322_p13 = scmp.lt.s32.totalorder %s3320_s17, %s3313_s14 }
  0x1c   : > { %p3323_p0 = por %p3322_p13, %p3321_p12 }
  0x1e   : > { %p3324_p1 = pnand %p3323_p0, %p3317_p11 }
  0x20   : > { %3327 = shalt.err (!%p3324_p1)
}
  0x21   : > { %s3521_s25 = smov 64   ;;  %s3522_s26 = smov 4  }
  0x22   : > { %3150 = dma.hbm_to_vmem [thread:$0]  (!%p3617_p7), %s160_s9, 1024, %s162_s11, %s3621_s13, %s3521_s25, %s3521_s25, %s3522_s26  }
  0x23   : > { %s3637_s8 = scalar_lea.hbm %s4179_s3, %s2665_s6  ;;  %s175_s10 = scalar_lea.vmem [#allocation12], %s2550_s30 }
  0x24   : > { %s182_s14 = sshll.u32 %s175_s10, 4  ;;  %s4183_s15 = sadd.s32 4294967295, %s3518_s23   ;;  %s3641_s14 = int_to_ptr.vmem [resolvable:$true] %s182_s14 }
  0x25   : > { %p78_p2 = scmp.ne.s32.totalorder %s3502_s19, %s3498_s18  ;;  %p3648_p4 = scmp.eq.s32.totalorder %s4183_s15, 0 }
  0x26   : > { %p3157_p5 = scmp.ge.s32.totalorder %s3518_s23, 1  ;;  %s3523_s6 = smov [#allocation8]  }
  0x27   : > { %p3655_p6 = por %p3648_p4, %p78_p2  ;;  %s136_s30 = sshll.u32 %s3523_s6, 4  ;;  %s137_s30 = int_to_ptr.vmem [resolvable:$true] %s136_s30 }
  0x28   : > { %p3144_p9 = pnand %p3157_p5, %p3648_p4  ;;  %s3339_s18 = scalar_lea.vmem %s137_s30, 4096 }
  0x29   : > { %p3340_p11 = scmp.ne.s32.totalorder %s137_s30, %s3339_s18  ;;  %p3347_p0 = scmp.lt.s32.totalorder %s137_s30, %s137_s30 }
  0x2a   : > { %p3330_p10 = pneg %p3144_p9  ;;  %p3348_p1 = scmp.lt.s32.totalorder %s3339_s18, %s3339_s18 }
  0x2c   : > { %p3342_p12 = pnand %p3340_p11, %p3330_p10  ;;  %p3349_p3 = por %p3348_p1, %p3347_p0 }
  0x2e   : > { %p3343_p13 = pneg %p3342_p12 }
  0x30   : > { %p3350_p8 = pnand %p3349_p3, %p3343_p13 }
  0x32   : > { %3353 = shalt.err (!%p3350_p8)
}
  0x33   : > { %s3524_s11 = smov 128   ;;  %s3525_s17 = smov 8  }
  0x34   : > { %s4190_s1 = sld [smem:[#allocation26_spill]]  ;;  %s3367_s10 = scalar_lea.vmem %s3641_s14, 1024 }
  0x35   : > { %p3368_p2 = scmp.ne.s32.totalorder %s3641_s14, %s3367_s10  ;;  %p4191_p5 = pneg %p3617_p7 }
  0x36   : > { %s3526_s6 = smov [#allocation12]  }
  0x37   : > { %p3370_p10 = pnand %p3368_p2, %p4191_p5  ;;  %s3372_s18 = sshll.u32 %s3526_s6, 4  ;;  %s3373_s18 = int_to_ptr.vmem [resolvable:$false] %s3372_s18 }
  0x38   : > { %s3374_s15 = scalar_lea.vmem %s3373_s18, 2048  ;;  %p3375_p3 = scmp.lt.s32.totalorder %s3641_s14, %s3373_s18 }
  0x39   : > { %p3371_p11 = pneg %p3370_p10  ;;  %p3376_p8 = scmp.lt.s32.totalorder %s3374_s15, %s3367_s10 }
  0x3a   : > { %3146 = dma.hbm_to_vmem [thread:$0]  (!%p3144_p9), %s4190_s1, 4096, %s137_s30, [#allocation9], %s3524_s11, %s3524_s11, %s3525_s17  }
  0x3b   : > { %p3377_p12 = por %p3376_p8, %p3375_p3 }
  0x3d   : > { %p3378_p13 = pnand %p3377_p12, %p3371_p11 }
  0x3f   : > { %3381 = shalt.err (!%p3378_p13)
}
  0x40   : > { %3153 = dma.hbm_to_vmem [thread:$0]  (!%p3617_p7), %s3637_s8, 1024, %s3641_s14, %s3621_s13, %s3521_s25, %s3521_s25, %s3522_s26  }
  0x41   : > { %s2556_s30 = sshll.u32 %s3605_s28, 2  ;;  %s2557_s11 = sshll.u32 %s3514_s22, 6 }
  0x42   : > { %s201_s27 = scalar_lea.hbm %s4180_s4, %s2557_s11  ;;  %s196_s7 = scalar_lea.vmem [#allocation13], %s2556_s30 }
  0x43   : > { %s203_s10 = sshll.u32 %s196_s7, 4  ;;  %s193_s6 = scalar_lea.sflag [#allocation14], %s3605_s28  ;;  %s204_s10 = int_to_ptr.vmem [resolvable:$true] %s203_s10 }
  0x44   : > { %s3395_s18 = scalar_lea.vmem %s204_s10, 64  ;;  %p4192_p0 = pmov %p4191_p5 }
  0x45   : > { %p3396_p9 = scmp.ne.s32.totalorder %s204_s10, %s3395_s18  ;;  %s3527_s1 = smov [#allocation13]  }
  0x46   : > { %s3400_s2 = sshll.u32 %s3527_s1, 4  ;;  %s3401_s2 = int_to_ptr.vmem [resolvable:$false] %s3400_s2 }
  0x47   : > { %p3398_p1 = pnand %p3396_p9, %p4192_p0  ;;  %s3402_s13 = scalar_lea.vmem %s3401_s2, 128 }
  0x48   : > { %p3403_p5 = scmp.lt.s32.totalorder %s204_s10, %s3401_s2  ;;  %p3404_p10 = scmp.lt.s32.totalorder %s3402_s13, %s3395_s18 }
  0x49   : > { %p3399_p2 = pneg %p3398_p1 }
  0x4a   : > { %p3405_p11 = por %p3404_p10, %p3403_p5 }
  0x4c   : > { %p3406_p3 = pnand %p3405_p11, %p3399_p2 }
  0x4e   : > { %3409 = shalt.err (!%p3406_p3)
}
  0x4f   : > { %3156 = dma.hbm_to_vmem [thread:$0]  (!%p3617_p7), %s201_s27, 64, %s204_s10, %s193_s6  }
  0x50   : > { %p4193_p8 = scmp.lt.s32.totalorder %s3518_s23, 1 }
  0x52   : > { %210 = sbr.rel (%p4193_p8) target bundleno = 971 (0x3cb), region = 36 }
  0x57   : > { %3479 = dma.done.wait (%p3648_p4), [#allocation9], 4096  }
  0x58   : > { %3481 = vsyncadd (%p3648_p4), [#allocation9], 4294963200  ;;  %s4194_s1 = sadd.s32 4294967295, %s3518_s23   ;;  %s218_s28 = sand.u32 1, %s3502_s19  }
  0x59   : > { %s216_s2 = sand.u32 1, %s4194_s1   ;;  %s2561_s25 = sshll.u32 %s218_s28, 6 }
  0x5a   : > { %s217_s26 = scalar_lea.sflag [#allocation11], %s216_s2  ;;  %s3698_s8 = scalar_lea.vmem [#allocation10], %s2561_s25 }
  0x5b   : > { %3483 = dma.done.wait (%p3655_p6), %s217_s26, 2048  }
  0x5c   : > { %3485 = vsyncadd (%p3655_p6), %s217_s26, 4294965248  ;;  %s2563_s12 = sshll.u32 %s218_s28, 2  ;;  %s3704_s14 = scalar_lea.vmem [#allocation12], %s2561_s25 }
  0x5d   : > { %s235_s16 = scalar_lea.sflag [#allocation14], %s218_s28  ;;  %s3706_s30 = scalar_lea.vmem [#allocation13], %s2563_s12 }
  0x5e   : > { %3487 = dma.done.wait (%p3655_p6), %s235_s16, 64  }
  0x5f   : > { %3489 = vsyncadd (%p3655_p6), %s235_s16, 4294967232  ;;  %p269_p7 = scmp.eq.s32.totalorder %s3510_s21, 0  ;;  %s3528_s11 = smov [#allocation2]  }
  0x60   : > { %s285_s17 = sshll.u32 %s3528_s11, 4  ;;  %s286_s17 = int_to_ptr.vmem [resolvable:$true] %s285_s17 }
  0x61   : > { %s3420_s15 = scalar_lea.vmem %s286_s17, 2048  ;;  %p3427_p9 = scmp.lt.s32.totalorder %s286_s17, %s286_s17 }
  0x62   : > { %p3421_p4 = scmp.ne.s32.totalorder %s286_s17, %s3420_s15  ;;  %p3428_p0 = scmp.lt.s32.totalorder %s3420_s15, %s3420_s15 }
  0x64   : > { %p3422_p12 = pnand %p3421_p4, %p269_p7  ;;  %p3429_p1 = por %p3428_p0, %p3427_p9 }
  0x66   : > { %p3423_p13 = pneg %p3422_p12 }
  0x68   : > { %p3430_p2 = pnand %p3429_p1, %p3423_p13 }
  0x6a   : > { %3433 = shalt.err (!%p3430_p2)  }
  0x6b   : > { %3141 = dma.hbm_to_vmem [thread:$0]  (%p269_p7), %s4176_s0, 2048, %s286_s17, [#allocation7] }
  0x6c   : > { %3491 = dma.done.wait (%p269_p7), [#allocation7], 2048 }
  0x6d   : > { %3493 = vsyncadd (%p269_p7), [#allocation7], 4294965248  ;;  %v3218_v0 = vld [vmem:[#allocation2 + $0x78] sm:$0xff]   ;;  %v3220_v2 = vld [vmem:[#allocation2 + $0x70] sm:$0xff]   ;;  %p2630_p6 = scmp.ge.s32.totalorder %s3510_s21, 2 }
  0x6e   : > { %v3219_v1 = vld [vmem:[#allocation2 + $0x38] sm:$0xff]   ;;  %2875 = vmatprep.subr.bf16.mxu0 %v3218_v0  ;;  %v3221_v3 = vld [vmem:[#allocation2 + $0x30] sm:$0xff]   ;;  %v3222_v4 = vld [vmem:[#allocation2 + $0x68] sm:$0xff]  }
  0x6f   : > { %2876 = vmatpush3.bf16.msra.mxu0 %v3219_v1  ;;  %v3223_v5 = vld [vmem:[#allocation2 + $0x28] sm:$0xff]   ;;  %v3224_v6 = vld [vmem:[#allocation2 + $0x60] sm:$0xff]   ;;  %v3226_v8 = vld [vmem:[#allocation2 + $0x58] sm:$0xff]  }
  0x70   : > { %2877 = vmatprep.subr.bf16.mxu0 %v3220_v2  ;;  %v3225_v7 = vld [vmem:[#allocation2 + $0x20] sm:$0xff]   ;;  %v3227_v9 = vld [vmem:[#allocation2 + $0x18] sm:$0xff]   ;;  %v3228_v10 = vld [vmem:[#allocation2 + $0x50] sm:$0xff]  }
  0x71   : > { %v3236_v11 = vld [vmem:[#allocation8 + $0x4] ss:$8 sps:$4 sm:$0xff]   ;;  %v3234_v17 = vld [vmem:[#allocation8] ss:$8 sps:$4 sm:$0xff]   ;;  %v3237_v18 = vld [vmem:[#allocation8 + $0x14] ss:$8 sps:$4 sm:$0xff]  }
  0x72   : > { %v3229_v12 = vld [vmem:[#allocation2 + $0x10] sm:$0xff]   ;;  %656 = vmatprep.mubr.bf16.mxu0 %v3236_v11  ;;  %v3230_v13 = vld [vmem:[#allocation2 + $0x48] sm:$0xff]   ;;  %v3232_v15 = vld [vmem:[#allocation2 + $0x40] sm:$0xff]  }
  0x73   : > { %2878 = vmatpush3.bf16.msra.mxu0 %v3221_v3  ;;  %v3231_v14 = vld [vmem:[#allocation2 + $0x8] sm:$0xff]   ;;  %v3233_v16 = vld [vmem:[#allocation2] sm:$0xff]   ;;  %v3239_v19 = vld [vmem:[#allocation8 + $0x10] ss:$8 sps:$4 sm:$0xff]  }
  0x74   : > { %2879 = vmatprep.subr.bf16.mxu0 %v3222_v4  ;;  %v3240_v20 = vld [vmem:[#allocation8 + $0x24] ss:$8 sps:$4 sm:$0xff]   ;;  %v3282_v21 = vld [vmem:[%s3698_s8 + $0x38] sm:$0xff]   ;;  %v3283_v22 = vld [vmem:[%s3698_s8 + $0x30] sm:$0xff]  }
  0x75   : > { %3035 = vmatprep.subr.bf16.mxu1 %v3282_v21  ;;  %v3284_v23 = vld [vmem:[%s3698_s8 + $0x28] sm:$0xff]   ;;  %v3243_v25 = vld [vmem:[#allocation8 + $0x34] ss:$8 sps:$4 sm:$0xff]   ;;  %v3245_v26 = vld [vmem:[#allocation8 + $0x30] ss:$8 sps:$4 sm:$0xff]  }
  0x76   : > { %3036 = vmatpush3.bf16.msra.mxu1 %v3282_v21  ;;  %v3242_v24 = vld [vmem:[#allocation8 + $0x20] ss:$8 sps:$4 sm:$0xff]   ;;  %v3246_v27 = vld [vmem:[#allocation8 + $0x44] ss:$8 sps:$4 sm:$0xff]   ;;  %v3249_v29 = vld [vmem:[#allocation8 + $0x54] ss:$8 sps:$4 sm:$0xff]  }
  0x77   : > { %2880 = vmatpush3.bf16.msra.mxu0 %v3223_v5  ;;  %3037 = vmatprep.subr.bf16.mxu1 %v3283_v22  ;;  %v3248_v28 = vld [vmem:[#allocation8 + $0x40] ss:$8 sps:$4 sm:$0xff]   ;;  %v3251_v30 = vld [vmem:[#allocation8 + $0x50] ss:$8 sps:$4 sm:$0xff]   ;;  %v3252_v31 = vld [vmem:[#allocation8 + $0x64] ss:$8 sps:$4 sm:$0xff]  }
  0x78   : > { %2881 = vmatprep.subr.bf16.mxu0 %v3224_v6  ;;  %v3254_v32 = vld [vmem:[#allocation8 + $0x60] ss:$8 sps:$4 sm:$0xff]   ;;  %v3255_v33 = vld [vmem:[#allocation8 + $0x74] ss:$8 sps:$4 sm:$0xff]   ;;  %v3257_v34 = vld [vmem:[#allocation8 + $0x70] ss:$8 sps:$4 sm:$0xff]  }
  0x79   : > { %v3258_v35 = vld [vmem:[#allocation8 + $0x84] ss:$8 sps:$4 sm:$0xff]   ;;  %v3260_v36 = vld [vmem:[#allocation8 + $0x80] ss:$8 sps:$4 sm:$0xff]   ;;  %v3261_v37 = vld [vmem:[#allocation8 + $0x94] ss:$8 sps:$4 sm:$0xff]  }
  0x7a   : > { %3038 = vmatpush3.bf16.msra.mxu1 %v3283_v22  ;;  %v3285_v38 = vld [vmem:[%s3698_s8 + $0x20] sm:$0xff]   ;;  %v3286_v39 = vld [vmem:[%s3698_s8 + $0x18] sm:$0xff]   ;;  %v3287_v42 = vld [vmem:[%s3698_s8 + $0x10] sm:$0xff]  }
  0x7b   : > { %2882 = vmatpush3.bf16.msra.mxu0 %v3225_v7  ;;  %3039 = vmatprep.subr.bf16.mxu1 %v3284_v23  ;;  %v3263_v40 = vld [vmem:[#allocation8 + $0x90] ss:$8 sps:$4 sm:$0xff]   ;;  %v3264_v41 = vld [vmem:[#allocation8 + $0xa4] ss:$8 sps:$4 sm:$0xff]   ;;  %v3266_v44 = vld [vmem:[#allocation8 + $0xa0] ss:$8 sps:$4 sm:$0xff]  }
  0x7c   : > { %2883 = vmatprep.subr.bf16.mxu0 %v3226_v8  ;;  %v3288_v43 = vld [vmem:[%s3698_s8 + $0x8] sm:$0xff]   ;;  %v3267_v45 = vld [vmem:[#allocation8 + $0xb4] ss:$8 sps:$4 sm:$0xff]   ;;  %v3289_v46 = vld [vmem:[%s3698_s8] sm:$0xff]  }
  0x7d   : > { %v3269_v47 = vld [vmem:[#allocation8 + $0xb0] ss:$8 sps:$4 sm:$0xff]   ;;  %v3270_v48 = vld [vmem:[#allocation8 + $0xc4] ss:$8 sps:$4 sm:$0xff]   ;;  %v3272_v49 = vld [vmem:[#allocation8 + $0xc0] ss:$8 sps:$4 sm:$0xff]  }
  0x7e   : > { %3040 = vmatpush3.bf16.msra.mxu1 %v3284_v23  ;;  %v3273_v50 = vld [vmem:[#allocation8 + $0xd4] ss:$8 sps:$4 sm:$0xff]   ;;  %v3275_v51 = vld [vmem:[#allocation8 + $0xd0] ss:$8 sps:$4 sm:$0xff]   ;;  %v3276_v52 = vld [vmem:[#allocation8 + $0xe4] ss:$8 sps:$4 sm:$0xff]  }
  0x7f   : > { %2884 = vmatpush3.bf16.msra.mxu0 %v3227_v9  ;;  %3041 = vmatprep.subr.bf16.mxu1 %v3285_v38  ;;  %v3278_v53 = vld [vmem:[#allocation8 + $0xe0] ss:$8 sps:$4 sm:$0xff]   ;;  %v3279_v54 = vld [vmem:[#allocation8 + $0xf4] ss:$8 sps:$4 sm:$0xff]   ;;  %v3281_v55 = vld [vmem:[#allocation8 + $0xf0] ss:$8 sps:$4 sm:$0xff]  }
  0x80   : > { %2885 = vmatprep.subr.bf16.mxu0 %v3228_v10  ;;  %v2702_v58 = vld [vmem:[#allocation2] sm:$0xff]   ;;  %v2845_v6 = vld [vmem:[#allocation2 + $0x8] sm:$0xff]  }
  0x81   : > { %v2703_v61 = vunpack.c.l.bf16 %v2702_v58  ;;  %v2704_v62 = vunpack.c.h.bf16 %v2702_v58  ;;  %v3290_v63 = vld [vmem:[%s3704_s14 + $0x38] sm:$0xff]   ;;  %v2707_v10 = vunpack.c.l.bf16 %v2845_v6  ;;  %v2708_v11 = vunpack.c.h.bf16 %v2845_v6  ;;  %v2849_v58 = vld [vmem:[#allocation2 + $0x28] sm:$0xff]   ;;  %v2850_v6 = vld [vmem:[#allocation2 + $0x30] sm:$0xff]  }
  0x82   : > { %3042 = vmatpush3.bf16.msra.mxu1 %v3285_v38 }
  0x83   : > { %2886 = vmatpush3.bf16.msra.mxu0 %v3229_v12  ;;  %3043 = vmatprep.subr.bf16.mxu1 %v3286_v39 }
  0x84   : > { %2887 = vmatprep.subr.bf16.mxu0 %v3230_v13 }
  0x86   : > { %3044 = vmatpush3.bf16.msra.mxu1 %v3286_v39 }
  0x87   : > { %2888 = vmatpush3.bf16.msra.mxu0 %v3231_v14  ;;  %3045 = vmatprep.subr.bf16.mxu1 %v3287_v42 }
  0x88   : > { %2889 = vmatprep.subr.bf16.mxu0 %v3232_v15 }
  0x8a   : > { %3046 = vmatpush3.bf16.msra.mxu1 %v3287_v42 }
  0x8b   : > { %2890 = vmatpush3.bf16.msra.mxu0 %v3233_v16  ;;  %3047 = vmatprep.subr.bf16.mxu1 %v3288_v43 }
  0x8e   : > { %657 = vmatmul.mubr.bf16.vlgmr.msra.gmra.mxu0 %v3234_v17  ;;  %3048 = vmatpush3.bf16.msra.mxu1 %v3288_v43 }
  0x8f   : > { %664 = vmatprep.mubr.bf16.mxu0 %v3237_v18  ;;  %3049 = vmatprep.subr.bf16.mxu1 %v3289_v46  ;;  %v2846_v18 = vld [vmem:[#allocation2 + $0x10] sm:$0xff]  }
  0x90   : > { %v2711_v23 = vunpack.c.l.bf16 %v2846_v18 }
  0x92   : > { %3050 = vmatpush3.bf16.msra.mxu1 %v3289_v46  ;;  %v2848_v46 = vld [vmem:[#allocation2 + $0x20] sm:$0xff]  }
  0x93   : > { %3083 = vmatprep.subr.bf16.mxu1 %v3290_v63 }
  0x96   : > { %665 = vmatmul.mubr.bf16.gmra.mxu0 %v3239_v19 }
  0x97   : > { %672 = vmatprep.mubr.bf16.mxu0 %v3240_v20  ;;  %v3291_v20 = vld [vmem:[%s3704_s14 + $0x30] sm:$0xff]  }
  0x9e   : > { %673 = vmatmul.mubr.bf16.gmra.mxu0 %v3242_v24  ;;  %v2712_v24 = vunpack.c.h.bf16 %v2846_v18  ;;  %v2851_v18 = vld [vmem:[#allocation2 + $0x38] sm:$0xff]  }
  0x9f   : > { %680 = vmatprep.mubr.bf16.mxu0 %v3243_v25 }
  0xa6   : > { %681 = vmatmul.mubr.bf16.gmra.mxu0 %v3245_v26 }
  0xa7   : > { %688 = vmatprep.mubr.bf16.mxu0 %v3246_v27  ;;  %v3292_v27 = vld [vmem:[%s3704_s14 + $0x28] sm:$0xff]  }
  0xae   : > { %689 = vmatmul.mubr.bf16.gmra.mxu0 %v3248_v28 }
  0xaf   : > { %696 = vmatprep.mubr.bf16.mxu0 %v3249_v29 }
  0xb6   : > { %697 = vmatmul.mubr.bf16.gmra.mxu0 %v3251_v30 }
  0xb7   : > { %704 = vmatprep.mubr.bf16.mxu0 %v3252_v31 }
  0xbe   : > { %705 = vmatmul.mubr.bf16.gmra.mxu0 %v3254_v32  ;;  %v2847_v32 = vld [vmem:[#allocation2 + $0x18] sm:$0xff]  }
  0xbf   : > { %712 = vmatprep.mubr.bf16.mxu0 %v3255_v33  ;;  %v2716_v38 = vunpack.c.h.bf16 %v2847_v32 }
  0xc6   : > { %713 = vmatmul.mubr.bf16.gmra.mxu0 %v3257_v34  ;;  %v3293_v34 = vld [vmem:[%s3704_s14 + $0x20] sm:$0xff]  }
  0xc7   : > { %720 = vmatprep.mubr.bf16.mxu0 %v3258_v35 }
  0xce   : > { %721 = vmatmul.mubr.bf16.gmra.mxu0 %v3260_v36 }
  0xcf   : > { %728 = vmatprep.mubr.bf16.mxu0 %v3261_v37  ;;  %v2715_v37 = vunpack.c.l.bf16 %v2847_v32 }
  0xd6   : > { %729 = vmatmul.mubr.bf16.gmra.mxu0 %v3263_v40 }
  0xd7   : > { %736 = vmatprep.mubr.bf16.mxu0 %v3264_v41  ;;  %v3294_v41 = vld [vmem:[%s3704_s14 + $0x18] sm:$0xff]  }
  0xde   : > { %737 = vmatmul.mubr.bf16.gmra.mxu0 %v3266_v44 }
  0xdf   : > { %744 = vmatprep.mubr.bf16.mxu0 %v3267_v45 }
  0xe6   : > { %745 = vmatmul.mubr.bf16.gmra.mxu0 %v3269_v47 }
  0xe7   : > { %752 = vmatprep.mubr.bf16.mxu0 %v3270_v48 }
  0xee   : > { %753 = vmatmul.mubr.bf16.gmra.mxu0 %v3272_v49 }
  0xef   : > { %760 = vmatprep.mubr.bf16.mxu0 %v3273_v50  ;;  %v2719_v50 = vunpack.c.l.bf16 %v2848_v46 }
  0xf6   : > { %761 = vmatmul.mubr.bf16.gmra.mxu0 %v3275_v51  ;;  %v2720_v51 = vunpack.c.h.bf16 %v2848_v46 }
  0xf7   : > { %768 = vmatprep.mubr.bf16.mxu0 %v3276_v52 }
  0xfe   : > { %769 = vmatmul.mubr.bf16.gmra.mxu0 %v3278_v53 }
  0xff   : > { %776 = vmatprep.mubr.bf16.mxu0 %v3279_v54 }
 0x106   : > { %777 = vmatmul.mubr.bf16.gmra.mxu0 %v3281_v55 }
 0x14e   : > { %v2891_v56 = vpop.f32.mrf.mxu0 }
 0x150   : > { %v2892_v57 = vpop.f32.mrf.mxu0 }
 0x151   : > { %v2893_v60 = vadd.f32 %v2892_v57, %v2891_v56 }
 0x152   : > { %v2894_v59 = vpop.f32.mrf.mxu0 }
 0x153   : > { %v1024_v3 = vadd.f32 %v2893_v60, %v2703_v61 }
 0x154   : > { %v2895_v0 = vpop.f32.mrf.mxu0 }
 0x155   : > { %v2896_v1 = vadd.f32 %v2895_v0, %v2894_v59 }
 0x156   : > { %v2897_v2 = vpop.f32.mrf.mxu0 }
 0x157   : > { %v1025_v4 = vadd.f32 %v2896_v1, %v2704_v62  ;;  %v2723_v62 = vunpack.c.l.bf16 %v2849_v58 }
 0x158   : > { %v2898_v5 = vpop.f32.mrf.mxu0 }
 0x159   : > { %v1057_v7 = vpack.c.bf16 %v1025_v4, %v1024_v3  ;;  %v2899_v9 = vadd.f32 %v2898_v5, %v2897_v2 }
 0x15a   : > { %v2900_v8 = vpop.f32.mrf.mxu0 }
 0x15b   : > { %3051 = vmatprep.mubr.bf16.mxu1 %v1057_v7  ;;  %v1026_v15 = vadd.f32 %v2899_v9, %v2707_v10  ;;  %v2727_v10 = vunpack.c.l.bf16 %v2850_v6 }
 0x15c   : > { %v2901_v12 = vpop.f32.mrf.mxu0 }
 0x15d   : > { %v2902_v13 = vadd.f32 %v2901_v12, %v2900_v8 }
 0x15e   : > { %v2903_v14 = vpop.f32.mrf.mxu0 }
 0x15f   : > { %v1027_v16 = vadd.f32 %v2902_v13, %v2708_v11  ;;  %v2728_v11 = vunpack.c.h.bf16 %v2850_v6 }
 0x160   : > { %v2904_v17 = vpop.f32.mrf.mxu0 }
 0x161   : > { %v1058_v19 = vpack.c.bf16 %v1027_v16, %v1026_v15  ;;  %v2905_v22 = vadd.f32 %v2904_v17, %v2903_v14 }
 0x162   : > { %v2906_v21 = vpop.f32.mrf.mxu0 }
 0x163   : > { %3052 = vmatmul.mubr.bf16.vlgmr.msra.gmra.mxu1 %v1058_v19  ;;  %v1028_v29 = vadd.f32 %v2905_v22, %v2711_v23  ;;  %v2731_v22 = vunpack.c.l.bf16 %v2851_v18  ;;  %v2732_v23 = vunpack.c.h.bf16 %v2851_v18 }
 0x164   : > { %v2907_v25 = vpop.f32.mrf.mxu0  ;;  %3084 = vmatpush3.bf16.msra.mxu1 %v3290_v63  ;;  %v2724_v63 = vunpack.c.h.bf16 %v2849_v58 }
 0x165   : > { %v2908_v26 = vadd.f32 %v2907_v25, %v2906_v21  ;;  %3085 = vmatprep.subr.bf16.mxu1 %v3291_v20 }
 0x166   : > { %v2909_v28 = vpop.f32.mrf.mxu0 }
 0x167   : > { %v1029_v30 = vadd.f32 %v2908_v26, %v2712_v24 }
 0x168   : > { %v2910_v31 = vpop.f32.mrf.mxu0  ;;  %3086 = vmatpush3.bf16.msra.mxu1 %v3291_v20 }
 0x169   : > { %v1059_v33 = vpack.c.bf16 %v1029_v30, %v1028_v29  ;;  %3087 = vmatprep.subr.bf16.mxu1 %v3292_v27  ;;  %v2911_v36 = vadd.f32 %v2910_v31, %v2909_v28  ;;  %v2852_v30 = vld [vmem:[#allocation2 + $0x40] sm:$0xff]  }
 0x16a   : > { %v2912_v35 = vpop.f32.mrf.mxu0 }
 0x16b   : > { %3055 = vmatprep.mubr.bf16.mxu1 %v1059_v33  ;;  %v1030_v43 = vadd.f32 %v2911_v36, %v2715_v37 }
 0x16c   : > { %v2913_v39 = vpop.f32.mrf.mxu0  ;;  %3088 = vmatpush3.bf16.msra.mxu1 %v3292_v27 }
 0x16d   : > { %v2914_v40 = vadd.f32 %v2913_v39, %v2912_v35  ;;  %3089 = vmatprep.subr.bf16.mxu1 %v3293_v34  ;;  %v2736_v35 = vunpack.c.h.bf16 %v2852_v30 }
 0x16e   : > { %v2915_v42 = vpop.f32.mrf.mxu0 }
 0x16f   : > { %v1031_v44 = vadd.f32 %v2914_v40, %v2716_v38 }
 0x170   : > { %v2916_v45 = vpop.f32.mrf.mxu0  ;;  %3090 = vmatpush3.bf16.msra.mxu1 %v3293_v34  ;;  %v2735_v34 = vunpack.c.l.bf16 %v2852_v30 }
 0x171   : > { %v1060_v47 = vpack.c.bf16 %v1031_v44, %v1030_v43  ;;  %3091 = vmatprep.subr.bf16.mxu1 %v3294_v41  ;;  %v2917_v49 = vadd.f32 %v2916_v45, %v2915_v42  ;;  %v2853_v42 = vld [vmem:[#allocation2 + $0x48] sm:$0xff]  }
 0x172   : > { %v2918_v48 = vpop.f32.mrf.mxu0  ;;  %v2739_v46 = vunpack.c.l.bf16 %v2853_v42 }
 0x173   : > { %3056 = vmatmul.mubr.bf16.gmra.mxu1 %v1060_v47  ;;  %v1032_v55 = vadd.f32 %v2917_v49, %v2719_v50  ;;  %v2740_v47 = vunpack.c.h.bf16 %v2853_v42 }
 0x174   : > { %v2919_v52 = vpop.f32.mrf.mxu0  ;;  %3092 = vmatpush3.bf16.msra.mxu1 %v3294_v41 }
 0x175   : > { %v2920_v53 = vadd.f32 %v2919_v52, %v2918_v48 }
 0x176   : > { %v2921_v54 = vpop.f32.mrf.mxu0 }
 0x177   : > { %v1033_v56 = vadd.f32 %v2920_v53, %v2720_v51 }
 0x178   : > { %v2922_v57 = vpop.f32.mrf.mxu0 }
 0x179   : > { %v1061_v59 = vpack.c.bf16 %v1033_v56, %v1032_v55  ;;  %v2923_v61 = vadd.f32 %v2922_v57, %v2921_v54  ;;  %v2854_v54 = vld [vmem:[#allocation2 + $0x50] sm:$0xff]  }
 0x17a   : > { %v2924_v60 = vpop.f32.mrf.mxu0  ;;  %v2743_v58 = vunpack.c.l.bf16 %v2854_v54 }
 0x17b   : > { %3059 = vmatprep.mubr.bf16.mxu1 %v1061_v59  ;;  %v1034_v3 = vadd.f32 %v2923_v61, %v2723_v62  ;;  %v2744_v59 = vunpack.c.h.bf16 %v2854_v54 }
 0x17c   : > { %v2925_v0 = vpop.f32.mrf.mxu0 }
 0x17d   : > { %v2926_v1 = vadd.f32 %v2925_v0, %v2924_v60  ;;  %v3295_v60 = vld [vmem:[%s3704_s14 + $0x10] sm:$0xff]  }
 0x17e   : > { %v2927_v2 = vpop.f32.mrf.mxu0  ;;  %3093 = vmatprep.subr.bf16.mxu1 %v3295_v60 }
 0x17f   : > { %v1035_v4 = vadd.f32 %v2926_v1, %v2724_v63  ;;  %3094 = vmatpush3.bf16.msra.mxu1 %v3295_v60 }
 0x180   : > { %v2928_v5 = vpop.f32.mrf.mxu0 }
 0x181   : > { %v1062_v7 = vpack.c.bf16 %v1035_v4, %v1034_v3  ;;  %v2929_v9 = vadd.f32 %v2928_v5, %v2927_v2  ;;  %v3296_v2 = vld [vmem:[%s3704_s14 + $0x8] sm:$0xff]   ;;  %v2855_v4 = vld [vmem:[#allocation2 + $0x58] sm:$0xff]  }
 0x182   : > { %v2930_v8 = vpop.f32.mrf.mxu0  ;;  %3095 = vmatprep.subr.bf16.mxu1 %v3296_v2 }
 0x183   : > { %3060 = vmatmul.mubr.bf16.gmra.mxu1 %v1062_v7  ;;  %v1036_v15 = vadd.f32 %v2929_v9, %v2727_v10  ;;  %v2748_v9 = vunpack.c.h.bf16 %v2855_v4  ;;  %v3297_v10 = vld [vmem:[%s3704_s14] sm:$0xff]  }
 0x184   : > { %v2931_v12 = vpop.f32.mrf.mxu0  ;;  %3096 = vmatpush3.bf16.msra.mxu1 %v3296_v2 }
 0x185   : > { %v2932_v13 = vadd.f32 %v2931_v12, %v2930_v8  ;;  %v2747_v8 = vunpack.c.l.bf16 %v2855_v4  ;;  %3097 = vmatprep.subr.bf16.mxu1 %v3297_v10 }
 0x186   : > { %v2933_v14 = vpop.f32.mrf.mxu0 }
 0x187   : > { %v1037_v16 = vadd.f32 %v2932_v13, %v2728_v11 }
 0x188   : > { %v2934_v17 = vpop.f32.mrf.mxu0  ;;  %3098 = vmatpush3.bf16.msra.mxu1 %v3297_v10 }
 0x189   : > { %v1063_v19 = vpack.c.bf16 %v1037_v16, %v1036_v15  ;;  %v2935_v21 = vadd.f32 %v2934_v17, %v2933_v14  ;;  %v2856_v17 = vld [vmem:[#allocation2 + $0x60] sm:$0xff]  }
 0x18a   : > { %v2936_v20 = vpop.f32.mrf.mxu0 }
 0x18b   : > { %3063 = vmatprep.mubr.bf16.mxu1 %v1063_v19  ;;  %v1038_v27 = vadd.f32 %v2935_v21, %v2731_v22  ;;  %v2751_v21 = vunpack.c.l.bf16 %v2856_v17  ;;  %v2752_v22 = vunpack.c.h.bf16 %v2856_v17 }
 0x18c   : > { %v2937_v24 = vpop.f32.mrf.mxu0 }
 0x18d   : > { %v2938_v25 = vadd.f32 %v2937_v24, %v2936_v20 }
 0x18e   : > { %v2939_v26 = vpop.f32.mrf.mxu0 }
 0x18f   : > { %v1039_v28 = vadd.f32 %v2938_v25, %v2732_v23 }
 0x190   : > { %v2940_v29 = vpop.f32.mrf.mxu0 }
 0x191   : > { %v1064_v31 = vpack.c.bf16 %v1039_v28, %v1038_v27  ;;  %v2941_v33 = vadd.f32 %v2940_v29, %v2939_v26  ;;  %v2857_v29 = vld [vmem:[#allocation2 + $0x68] sm:$0xff]  }
 0x192   : > { %v2942_v32 = vpop.f32.mrf.mxu0 }
 0x193   : > { %3064 = vmatmul.mubr.bf16.gmra.mxu1 %v1064_v31  ;;  %v1040_v39 = vadd.f32 %v2941_v33, %v2735_v34  ;;  %v2755_v33 = vunpack.c.l.bf16 %v2857_v29  ;;  %v2756_v34 = vunpack.c.h.bf16 %v2857_v29 }
 0x194   : > { %v2943_v36 = vpop.f32.mrf.mxu0 }
 0x195   : > { %v2944_v37 = vadd.f32 %v2943_v36, %v2942_v32 }
 0x196   : > { %v2945_v38 = vpop.f32.mrf.mxu0 }
 0x197   : > { %v1041_v40 = vadd.f32 %v2944_v37, %v2736_v35 }
 0x198   : > { %v2946_v41 = vpop.f32.mrf.mxu0 }
 0x199   : > { %v1065_v43 = vpack.c.bf16 %v1041_v40, %v1040_v39  ;;  %v2947_v45 = vadd.f32 %v2946_v41, %v2945_v38  ;;  %v2858_v38 = vld [vmem:[#allocation2 + $0x70] sm:$0xff]  }
 0x19a   : > { %v2948_v44 = vpop.f32.mrf.mxu0 }
 0x19b   : > { %3067 = vmatprep.mubr.bf16.mxu1 %v1065_v43  ;;  %v1042_v51 = vadd.f32 %v2947_v45, %v2739_v46  ;;  %v2760_v46 = vunpack.c.h.bf16 %v2858_v38 }
 0x19c   : > { %v2949_v48 = vpop.f32.mrf.mxu0 }
 0x19d   : > { %v2950_v49 = vadd.f32 %v2949_v48, %v2948_v44  ;;  %v2759_v44 = vunpack.c.l.bf16 %v2858_v38 }
 0x19e   : > { %v2951_v50 = vpop.f32.mrf.mxu0 }
 0x19f   : > { %v1043_v52 = vadd.f32 %v2950_v49, %v2740_v47 }
 0x1a0   : > { %v2952_v53 = vpop.f32.mrf.mxu0 }
 0x1a1   : > { %v1066_v55 = vpack.c.bf16 %v1043_v52, %v1042_v51  ;;  %v2953_v57 = vadd.f32 %v2952_v53, %v2951_v50  ;;  %v2859_v51 = vld [vmem:[#allocation2 + $0x78] sm:$0xff]  }
 0x1a2   : > { %v2954_v56 = vpop.f32.mrf.mxu0 }
 0x1a3   : > { %3068 = vmatmul.mubr.bf16.gmra.mxu1 %v1066_v55  ;;  %v1044_v0 = vadd.f32 %v2953_v57, %v2743_v58  ;;  %v2763_v55 = vunpack.c.l.bf16 %v2859_v51  ;;  %v2764_v58 = vunpack.c.h.bf16 %v2859_v51 }
 0x1a4   : > { %v2955_v61 = vpop.f32.mrf.mxu0 }
 0x1a5   : > { %v2956_v62 = vadd.f32 %v2955_v61, %v2954_v56 }
 0x1a6   : > { %v2957_v63 = vpop.f32.mrf.mxu0 }
 0x1a7   : > { %v1045_v1 = vadd.f32 %v2956_v62, %v2744_v59 }
 0x1a8   : > { %v2958_v3 = vpop.f32.mrf.mxu0 }
 0x1a9   : > { %v1067_v5 = vpack.c.bf16 %v1045_v1, %v1044_v0  ;;  %v2959_v7 = vadd.f32 %v2958_v3, %v2957_v63  ;;  %v1089_v0 = vlaneseq  ;;  %v3746_v3 = vld [vmem:[%s3706_s30] sm:$0xf] }
 0x1aa   : > { %v2960_v6 = vpop.f32.mrf.mxu0 }
 0x1ab   : > { %3071 = vmatprep.mubr.bf16.mxu1 %v1067_v5  ;;  %v1046_v14 = vadd.f32 %v2959_v7, %v2747_v8  ;;  %v3740_v1 = vshrl.u32 %v1089_v0, 7 }
 0x1ac   : > { %v2961_v11 = vpop.f32.mrf.mxu0 }
 0x1ad   : > { %v2962_v12 = vadd.f32 %v2961_v11, %v2960_v6  ;;  %v3743_v2 = vsub.s32 0, %v3740_v1 }
 0x1ae   : > { %v2963_v13 = vpop.f32.mrf.mxu0 }
 0x1af   : > { %v1047_v15 = vadd.f32 %v2962_v12, %v2748_v9  ;;  %v3750_v5 = vrot.slane %v3746_v3, %v3743_v2 }
 0x1b0   : > { %v2964_v16 = vpop.f32.mrf.mxu0 }
 0x1b1   : > { %v1068_v18 = vpack.c.bf16 %v1047_v15, %v1046_v14  ;;  %v2965_v20 = vadd.f32 %v2964_v16, %v2963_v13 }
 0x1b2   : > { %v2966_v19 = vpop.f32.mrf.mxu0 }
 0x1b3   : > { %3072 = vmatmul.mubr.bf16.gmra.mxu1 %v1068_v18  ;;  %v1048_v26 = vadd.f32 %v2965_v20, %v2751_v21 }
 0x1b4   : > { %v2967_v23 = vpop.f32.mrf.mxu0 }
 0x1b5   : > { %v2968_v24 = vadd.f32 %v2967_v23, %v2966_v19 }
 0x1b6   : > { %v2969_v25 = vpop.f32.mrf.mxu0 }
 0x1b7   : > { %v1049_v27 = vadd.f32 %v2968_v24, %v2752_v22 }
 0x1b8   : > { %v2970_v28 = vpop.f32.mrf.mxu0 }
 0x1b9   : > { %v1069_v30 = vpack.c.bf16 %v1049_v27, %v1048_v26  ;;  %v2971_v32 = vadd.f32 %v2970_v28, %v2969_v25 }
 0x1ba   : > { %v2972_v31 = vpop.f32.mrf.mxu0 }
 0x1bb   : > { %3075 = vmatprep.mubr.bf16.mxu1 %v1069_v30  ;;  %v1050_v39 = vadd.f32 %v2971_v32, %v2755_v33 }
 0x1bc   : > { %v2973_v35 = vpop.f32.mrf.mxu0 }
 0x1bd   : > { %v2974_v36 = vadd.f32 %v2973_v35, %v2972_v31 }
 0x1be   : > { %v2975_v37 = vpop.f32.mrf.mxu0 }
 0x1bf   : > { %v1051_v40 = vadd.f32 %v2974_v36, %v2756_v34 }
 0x1c0   : > { %v2976_v41 = vpop.f32.mrf.mxu0 }
 0x1c1   : > { %v1070_v42 = vpack.c.bf16 %v1051_v40, %v1050_v39  ;;  %v2977_v43 = vadd.f32 %v2976_v41, %v2975_v37 }
 0x1c2   : > { %v2978_v45 = vpop.f32.mrf.mxu0 }
 0x1c3   : > { %3076 = vmatmul.mubr.bf16.gmra.mxu1 %v1070_v42  ;;  %v1052_v48 = vadd.f32 %v2977_v43, %v2759_v44 }
 0x1c4   : > { %v2979_v47 = vpop.f32.mrf.mxu0 }
 0x1c5   : > { %v2980_v49 = vadd.f32 %v2979_v47, %v2978_v45 }
 0x1c6   : > { %v2981_v50 = vpop.f32.mrf.mxu0 }
 0x1c7   : > { %v1053_v52 = vadd.f32 %v2980_v49, %v2760_v46 }
 0x1c8   : > { %v2982_v53 = vpop.f32.mrf.mxu0 }
 0x1c9   : > { %v2983_v54 = vadd.f32 %v2982_v53, %v2981_v50  ;;  %v1071_v56 = vpack.c.bf16 %v1053_v52, %v1052_v48 }
 0x1ca   : > { %v2984_v57 = vpop.f32.mrf.mxu0 }
 0x1cb   : > { %3079 = vmatprep.mubr.bf16.mxu1 %v1071_v56  ;;  %v1054_v60 = vadd.f32 %v2983_v54, %v2763_v55 }
 0x1cc   : > { %v2985_v59 = vpop.f32.mrf.mxu0 }
 0x1cd   : > { %v2986_v61 = vadd.f32 %v2985_v59, %v2984_v57 }
 0x1cf   : > { %v1055_v62 = vadd.f32 %v2986_v61, %v2764_v58 }
 0x1d1   : > { %v1072_v63 = vpack.c.bf16 %v1055_v62, %v1054_v60 }
 0x1d3   : > { %3080 = vmatmul.mubr.bf16.gmra.mxu1 %v1072_v63 }
 0x223   : > { %v3053_v4 = vpop.f32.mrf.mxu1 }
 0x224   : > { %v1184_v10 = vadd.f32 %v3053_v4, %v3750_v5 }
 0x225   : > { %v1175_v6 = vpop.f32.mrf.mxu1 }
 0x226   : > { %v1176_v8 = vadd.f32 %v1175_v6, %v3750_v5  ;;  %v1304_v16 = vmax.f32 %v1184_v10, 0.0 }
 0x227   : > { %v3054_v7 = vpop.f32.mrf.mxu1 }
 0x228   : > { %v1187_v9 = vadd.f32 %v3054_v7, %v3750_v5  ;;  %v1302_v14 = vmax.f32 %v1176_v8, 0.0 }
 0x229   : > { %v1178_v11 = vpop.f32.mrf.mxu1 }
 0x22a   : > { %v1179_v12 = vadd.f32 %v1178_v11, %v3750_v5  ;;  %v1305_v13 = vmax.f32 %v1187_v9, 0.0 }
 0x22c   : > { %v1303_v15 = vmax.f32 %v1179_v12, 0.0  ;;  %v1335_v18 = vpack.c.bf16 %v1305_v13, %v1304_v16 }
 0x22e   : > { %v1334_v17 = vpack.c.bf16 %v1303_v15, %v1302_v14 }
 0x230   : > { %3099 = vmatprep.mubr.bf16.mxu1 %v1334_v17 }
 0x231   : > { %3100 = vmatmul.mubr.bf16.vlgmr.msra.gmra.mxu1 %v1335_v18 }
 0x233   : > { %v3057_v19 = vpop.f32.mrf.mxu1 }
 0x234   : > { %v1200_v24 = vadd.f32 %v3057_v19, %v3750_v5 }
 0x235   : > { %v1191_v20 = vpop.f32.mrf.mxu1 }
 0x236   : > { %v1192_v22 = vadd.f32 %v1191_v20, %v3750_v5  ;;  %v1308_v30 = vmax.f32 %v1200_v24, 0.0 }
 0x237   : > { %v3058_v21 = vpop.f32.mrf.mxu1 }
 0x238   : > { %v1203_v23 = vadd.f32 %v3058_v21, %v3750_v5  ;;  %v1306_v28 = vmax.f32 %v1192_v22, 0.0 }
 0x239   : > { %v1194_v25 = vpop.f32.mrf.mxu1 }
 0x23a   : > { %v1195_v26 = vadd.f32 %v1194_v25, %v3750_v5  ;;  %v1309_v27 = vmax.f32 %v1203_v23, 0.0 }
 0x23c   : > { %v1307_v29 = vmax.f32 %v1195_v26, 0.0  ;;  %v1337_v32 = vpack.c.bf16 %v1309_v27, %v1308_v30 }
 0x23e   : > { %v1336_v31 = vpack.c.bf16 %v1307_v29, %v1306_v28 }
 0x240   : > { %3103 = vmatprep.mubr.bf16.mxu1 %v1336_v31 }
 0x241   : > { %3104 = vmatmul.mubr.bf16.gmra.mxu1 %v1337_v32 }
 0x243   : > { %v3061_v33 = vpop.f32.mrf.mxu1 }
 0x244   : > { %v1216_v38 = vadd.f32 %v3061_v33, %v3750_v5 }
 0x245   : > { %v1207_v34 = vpop.f32.mrf.mxu1 }
 0x246   : > { %v1208_v36 = vadd.f32 %v1207_v34, %v3750_v5  ;;  %v1312_v44 = vmax.f32 %v1216_v38, 0.0 }
 0x247   : > { %v3062_v35 = vpop.f32.mrf.mxu1 }
 0x248   : > { %v1219_v37 = vadd.f32 %v3062_v35, %v3750_v5  ;;  %v1310_v42 = vmax.f32 %v1208_v36, 0.0 }
 0x249   : > { %v1210_v39 = vpop.f32.mrf.mxu1 }
 0x24a   : > { %v1211_v40 = vadd.f32 %v1210_v39, %v3750_v5  ;;  %v1313_v41 = vmax.f32 %v1219_v37, 0.0 }
 0x24c   : > { %v1311_v43 = vmax.f32 %v1211_v40, 0.0  ;;  %v1339_v46 = vpack.c.bf16 %v1313_v41, %v1312_v44 }
 0x24e   : > { %v1338_v45 = vpack.c.bf16 %v1311_v43, %v1310_v42 }
 0x250   : > { %3107 = vmatprep.mubr.bf16.mxu1 %v1338_v45 }
 0x251   : > { %3108 = vmatmul.mubr.bf16.gmra.mxu1 %v1339_v46 }
 0x253   : > { %v3065_v47 = vpop.f32.mrf.mxu1 }
 0x254   : > { %v1232_v52 = vadd.f32 %v3065_v47, %v3750_v5 }
 0x255   : > { %v1223_v48 = vpop.f32.mrf.mxu1 }
 0x256   : > { %v1224_v50 = vadd.f32 %v1223_v48, %v3750_v5  ;;  %v1316_v58 = vmax.f32 %v1232_v52, 0.0 }
 0x257   : > { %v3066_v49 = vpop.f32.mrf.mxu1 }
 0x258   : > { %v1235_v51 = vadd.f32 %v3066_v49, %v3750_v5  ;;  %v1314_v56 = vmax.f32 %v1224_v50, 0.0 }
 0x259   : > { %v1226_v53 = vpop.f32.mrf.mxu1 }
 0x25a   : > { %v1227_v54 = vadd.f32 %v1226_v53, %v3750_v5  ;;  %v1317_v55 = vmax.f32 %v1235_v51, 0.0 }
 0x25c   : > { %v1315_v57 = vmax.f32 %v1227_v54, 0.0  ;;  %v1341_v60 = vpack.c.bf16 %v1317_v55, %v1316_v58  ;;  %v1368_v58 = vsub.s32 1, %v3740_v1 }
 0x25e   : > { %v1340_v59 = vpack.c.bf16 %v1315_v57, %v1314_v56  ;;  %v3529_v57 = vmov 0.0  }
 0x25f   : > { %297 = vst [vmem:[#allocation5] sm:$0x1] %v3529_v57  ;;  %298 = vst [vmem:[#allocation6] sm:$0x1] %v3529_v57 }
 0x260   : > { %3111 = vmatprep.mubr.bf16.mxu1 %v1340_v59  ;;  %v3786_v59 = vrot.slane %v3746_v3, %v1368_v58 }
 0x261   : > { %3112 = vmatmul.mubr.bf16.gmra.mxu1 %v1341_v60 }
 0x263   : > { %v3069_v61 = vpop.f32.mrf.mxu1 }
 0x264   : > { %v1248_v6 = vadd.f32 %v3069_v61, %v3750_v5 }
 0x265   : > { %v1239_v62 = vpop.f32.mrf.mxu1 }
 0x266   : > { %v1240_v0 = vadd.f32 %v1239_v62, %v3750_v5  ;;  %v1320_v12 = vmax.f32 %v1248_v6, 0.0 }
 0x267   : > { %v3070_v63 = vpop.f32.mrf.mxu1 }
 0x268   : > { %v1251_v4 = vadd.f32 %v3070_v63, %v3750_v5  ;;  %v1318_v10 = vmax.f32 %v1240_v0, 0.0 }
 0x269   : > { %v1242_v7 = vpop.f32.mrf.mxu1 }
 0x26a   : > { %v1243_v8 = vadd.f32 %v1242_v7, %v3750_v5  ;;  %v1321_v9 = vmax.f32 %v1251_v4, 0.0 }
 0x26c   : > { %v1319_v11 = vmax.f32 %v1243_v8, 0.0  ;;  %v1343_v14 = vpack.c.bf16 %v1321_v9, %v1320_v12 }
 0x26e   : > { %v1342_v13 = vpack.c.bf16 %v1319_v11, %v1318_v10 }
 0x270   : > { %3115 = vmatprep.mubr.bf16.mxu1 %v1342_v13 }
 0x271   : > { %3116 = vmatmul.mubr.bf16.gmra.mxu1 %v1343_v14 }
 0x273   : > { %v3073_v15 = vpop.f32.mrf.mxu1 }
 0x274   : > { %v1264_v20 = vadd.f32 %v3073_v15, %v3750_v5 }
 0x275   : > { %v1255_v16 = vpop.f32.mrf.mxu1 }
 0x276   : > { %v1256_v18 = vadd.f32 %v1255_v16, %v3750_v5  ;;  %v1324_v26 = vmax.f32 %v1264_v20, 0.0 }
 0x277   : > { %v3074_v17 = vpop.f32.mrf.mxu1 }
 0x278   : > { %v1267_v19 = vadd.f32 %v3074_v17, %v3750_v5  ;;  %v1322_v24 = vmax.f32 %v1256_v18, 0.0 }
 0x279   : > { %v1258_v21 = vpop.f32.mrf.mxu1 }
 0x27a   : > { %v1259_v22 = vadd.f32 %v1258_v21, %v3750_v5  ;;  %v1325_v23 = vmax.f32 %v1267_v19, 0.0 }
 0x27c   : > { %v1323_v25 = vmax.f32 %v1259_v22, 0.0  ;;  %v1345_v28 = vpack.c.bf16 %v1325_v23, %v1324_v26 }
 0x27e   : > { %v1344_v27 = vpack.c.bf16 %v1323_v25, %v1322_v24 }
 0x280   : > { %3119 = vmatprep.mubr.bf16.mxu1 %v1344_v27 }
 0x281   : > { %3120 = vmatmul.mubr.bf16.gmra.mxu1 %v1345_v28 }
 0x283   : > { %v3077_v29 = vpop.f32.mrf.mxu1 }
 0x284   : > { %v1280_v34 = vadd.f32 %v3077_v29, %v3750_v5 }
 0x285   : > { %v1271_v30 = vpop.f32.mrf.mxu1 }
 0x286   : > { %v1272_v32 = vadd.f32 %v1271_v30, %v3750_v5  ;;  %v1328_v40 = vmax.f32 %v1280_v34, 0.0 }
 0x287   : > { %v3078_v31 = vpop.f32.mrf.mxu1 }
 0x288   : > { %v1283_v33 = vadd.f32 %v3078_v31, %v3750_v5  ;;  %v1326_v38 = vmax.f32 %v1272_v32, 0.0 }
 0x289   : > { %v1274_v35 = vpop.f32.mrf.mxu1 }
 0x28a   : > { %v1275_v36 = vadd.f32 %v1274_v35, %v3750_v5  ;;  %v1329_v37 = vmax.f32 %v1283_v33, 0.0 }
 0x28c   : > { %v1327_v39 = vmax.f32 %v1275_v36, 0.0  ;;  %v1347_v42 = vpack.c.bf16 %v1329_v37, %v1328_v40 }
 0x28e   : > { %v1346_v41 = vpack.c.bf16 %v1327_v39, %v1326_v38 }
 0x290   : > { %3123 = vmatprep.mubr.bf16.mxu1 %v1346_v41 }
 0x291   : > { %3124 = vmatmul.mubr.bf16.gmra.mxu1 %v1347_v42 }
 0x293   : > { %v3081_v43 = vpop.f32.mrf.mxu1 }
 0x294   : > { %v1296_v44 = vadd.f32 %v3081_v43, %v3750_v5 }
 0x295   : > { %v1287_v45 = vpop.f32.mrf.mxu1 }
 0x296   : > { %v1288_v46 = vadd.f32 %v1287_v45, %v3750_v5  ;;  %v1332_v49 = vmax.f32 %v1296_v44, 0.0 }
 0x297   : > { %v3082_v47 = vpop.f32.mrf.mxu1 }
 0x298   : > { %v1299_v48 = vadd.f32 %v3082_v47, %v3750_v5  ;;  %v1330_v51 = vmax.f32 %v1288_v46, 0.0 }
 0x299   : > { %v1290_v50 = vpop.f32.mrf.mxu1 }
 0x29a   : > { %v1333_v52 = vmax.f32 %v1299_v48, 0.0  ;;  %v1291_v53 = vadd.f32 %v1290_v50, %v3750_v5 }
 0x29c   : > { %v1331_v54 = vmax.f32 %v1291_v53, 0.0  ;;  %v1349_v55 = vpack.c.bf16 %v1333_v52, %v1332_v49 }
 0x29e   : > { %v1348_v56 = vpack.c.bf16 %v1331_v54, %v1330_v51 }
 0x2a0   : > { %3127 = vmatprep.mubr.bf16.mxu1 %v1348_v56 }
 0x2a1   : > { %3128 = vmatmul.mubr.bf16.gmra.mxu1 %v1349_v55 }
 0x2f1   : > { %v3101_v60 = vpop.f32.mrf.mxu1 }
 0x2f2   : > { %v3789_v61 = vadd.f32 %v3101_v60, %v3786_v59 }
 0x2f3   : > { %v1452_v62 = vpop.f32.mrf.mxu1 }
 0x2f4   : > { %1582 = vst [vmem:[#allocation3 + $0x10] sm:$0xff] %v3789_v61  ;;  %v3793_v5 = vadd.f32 %v1452_v62, %v3786_v59  ;;  %v1970_v21 = vmul.f32 %v3789_v61, %v3789_v61 }
 0x2f5   : > { %v3102_v63 = vpop.f32.mrf.mxu1 }
 0x2f6   : > { %1580 = vst [vmem:[#allocation3] sm:$0xff] %v3793_v5  ;;  %v3797_v0 = vadd.f32 %v3102_v63, %v3786_v59  ;;  %v1968_v15 = vmul.f32 %v3793_v5, %v3793_v5 }
 0x2f7   : > { %v1455_v4 = vpop.f32.mrf.mxu1 }
 0x2f8   : > { %1583 = vst [vmem:[#allocation3 + $0x18] sm:$0xff] %v3797_v0  ;;  %v3801_v3 = vadd.f32 %v1455_v4, %v3786_v59  ;;  %v1971_v28 = vmul.f32 %v3797_v0, %v3797_v0 }
 0x2fa   : > { %1581 = vst [vmem:[#allocation3 + $0x8] sm:$0xff] %v3801_v3  ;;  %v1969_v14 = vmul.f32 %v3801_v3, %v3801_v3  ;;  %v1928_v16 = vadd.f32 %v3801_v3, %v3793_v5 }
 0x2fc   : > { %v2000_v18 = vadd.f32 %v1969_v14, %v1968_v15  ;;  %v1929_v22 = vadd.f32 %v1928_v16, %v3789_v61 }
 0x2fe   : > { %v2001_v25 = vadd.f32 %v2000_v18, %v1970_v21  ;;  %v1930_v29 = vadd.f32 %v1929_v22, %v3797_v0 }
 0x300   : > { %v2002_v33 = vadd.f32 %v2001_v25, %v1971_v28 }
 0x301   : > { %v3105_v6 = vpop.f32.mrf.mxu1 }
 0x302   : > { %v3805_v7 = vadd.f32 %v3105_v6, %v3786_v59 }
 0x303   : > { %v1468_v8 = vpop.f32.mrf.mxu1 }
 0x304   : > { %1586 = vst [vmem:[#allocation3 + $0x30] sm:$0xff] %v3805_v7  ;;  %v3809_v9 = vadd.f32 %v1468_v8, %v3786_v59  ;;  %v1974_v38 = vmul.f32 %v3805_v7, %v3805_v7 }
 0x305   : > { %v3106_v10 = vpop.f32.mrf.mxu1 }
 0x306   : > { %1584 = vst [vmem:[#allocation3 + $0x20] sm:$0xff] %v3809_v9  ;;  %v3813_v11 = vadd.f32 %v3106_v10, %v3786_v59  ;;  %v1972_v30 = vmul.f32 %v3809_v9, %v3809_v9  ;;  %v1931_v32 = vadd.f32 %v1930_v29, %v3809_v9 }
 0x307   : > { %v1471_v12 = vpop.f32.mrf.mxu1 }
 0x308   : > { %1587 = vst [vmem:[#allocation3 + $0x38] sm:$0xff] %v3813_v11  ;;  %v3817_v13 = vadd.f32 %v1471_v12, %v3786_v59  ;;  %v2003_v35 = vadd.f32 %v2002_v33, %v1972_v30  ;;  %v1975_v44 = vmul.f32 %v3813_v11, %v3813_v11 }
 0x30a   : > { %1585 = vst [vmem:[#allocation3 + $0x28] sm:$0xff] %v3817_v13  ;;  %v1973_v34 = vmul.f32 %v3817_v13, %v3817_v13  ;;  %v1932_v36 = vadd.f32 %v1931_v32, %v3817_v13 }
 0x30c   : > { %v2004_v37 = vadd.f32 %v2003_v35, %v1973_v34  ;;  %v1933_v39 = vadd.f32 %v1932_v36, %v3805_v7 }
 0x30e   : > { %v2005_v41 = vadd.f32 %v2004_v37, %v1974_v38  ;;  %v1934_v45 = vadd.f32 %v1933_v39, %v3813_v11 }
 0x310   : > { %v2006_v50 = vadd.f32 %v2005_v41, %v1975_v44 }
 0x311   : > { %v3109_v17 = vpop.f32.mrf.mxu1 }
 0x312   : > { %v3827_v19 = vadd.f32 %v3109_v17, %v3786_v59 }
 0x313   : > { %v1484_v20 = vpop.f32.mrf.mxu1 }
 0x314   : > { %1590 = vst [vmem:[#allocation3 + $0x50] sm:$0xff] %v3827_v19  ;;  %v3834_v23 = vadd.f32 %v1484_v20, %v3786_v59  ;;  %v1978_v58 = vmul.f32 %v3827_v19, %v3827_v19 }
 0x315   : > { %v3110_v24 = vpop.f32.mrf.mxu1 }
 0x316   : > { %1588 = vst [vmem:[#allocation3 + $0x40] sm:$0xff] %v3834_v23  ;;  %v3838_v26 = vadd.f32 %v3110_v24, %v3786_v59  ;;  %v1976_v46 = vmul.f32 %v3834_v23, %v3834_v23  ;;  %v1935_v49 = vadd.f32 %v1934_v45, %v3834_v23 }
 0x317   : > { %v1487_v27 = vpop.f32.mrf.mxu1 }
 0x318   : > { %1591 = vst [vmem:[#allocation3 + $0x58] sm:$0xff] %v3838_v26  ;;  %v3847_v31 = vadd.f32 %v1487_v27, %v3786_v59  ;;  %v2007_v54 = vadd.f32 %v2006_v50, %v1976_v46  ;;  %v1979_v63 = vmul.f32 %v3838_v26, %v3838_v26 }
 0x31a   : > { %1589 = vst [vmem:[#allocation3 + $0x48] sm:$0xff] %v3847_v31  ;;  %v1977_v51 = vmul.f32 %v3847_v31, %v3847_v31  ;;  %v1936_v55 = vadd.f32 %v1935_v49, %v3847_v31 }
 0x31c   : > { %v2008_v57 = vadd.f32 %v2007_v54, %v1977_v51  ;;  %v1937_v60 = vadd.f32 %v1936_v55, %v3827_v19 }
 0x31e   : > { %v2009_v62 = vadd.f32 %v2008_v57, %v1978_v58  ;;  %v1938_v4 = vadd.f32 %v1937_v60, %v3838_v26 }
 0x320   : > { %v2010_v12 = vadd.f32 %v2009_v62, %v1979_v63 }
 0x321   : > { %v3113_v40 = vpop.f32.mrf.mxu1 }
 0x322   : > { %v3858_v42 = vadd.f32 %v3113_v40, %v3786_v59 }
 0x323   : > { %v1500_v43 = vpop.f32.mrf.mxu1 }
 0x324   : > { %1594 = vst [vmem:[#allocation3 + $0x70] sm:$0xff] %v3858_v42  ;;  %v3867_v47 = vadd.f32 %v1500_v43, %v3786_v59  ;;  %v1982_v27 = vmul.f32 %v3858_v42, %v3858_v42 }
 0x325   : > { %v3114_v48 = vpop.f32.mrf.mxu1 }
 0x326   : > { %1592 = vst [vmem:[#allocation3 + $0x60] sm:$0xff] %v3867_v47  ;;  %v3874_v52 = vadd.f32 %v3114_v48, %v3786_v59  ;;  %v1980_v6 = vmul.f32 %v3867_v47, %v3867_v47  ;;  %v1939_v10 = vadd.f32 %v1938_v4, %v3867_v47 }
 0x327   : > { %v1503_v53 = vpop.f32.mrf.mxu1 }
 0x328   : > { %1595 = vst [vmem:[#allocation3 + $0x78] sm:$0xff] %v3874_v52  ;;  %v3879_v56 = vadd.f32 %v1503_v53, %v3786_v59  ;;  %v2011_v17 = vadd.f32 %v2010_v12, %v1980_v6  ;;  %v1983_v32 = vmul.f32 %v3874_v52, %v3874_v52 }
 0x32a   : > { %1593 = vst [vmem:[#allocation3 + $0x68] sm:$0xff] %v3879_v56  ;;  %v1981_v14 = vmul.f32 %v3879_v56, %v3879_v56  ;;  %v1940_v18 = vadd.f32 %v1939_v10, %v3879_v56 }
 0x32c   : > { %v2012_v22 = vadd.f32 %v2011_v17, %v1981_v14  ;;  %v1941_v28 = vadd.f32 %v1940_v18, %v3858_v42 }
 0x32e   : > { %v2013_v30 = vadd.f32 %v2012_v22, %v1982_v27  ;;  %v1942_v33 = vadd.f32 %v1941_v28, %v3874_v52 }
 0x330   : > { %v2014_v36 = vadd.f32 %v2013_v30, %v1983_v32 }
 0x331   : > { %v3117_v8 = vpop.f32.mrf.mxu1 }
 0x332   : > { %v3894_v15 = vadd.f32 %v3117_v8, %v3786_v59 }
 0x333   : > { %v1516_v16 = vpop.f32.mrf.mxu1 }
 0x334   : > { %1598 = vst [vmem:[#allocation3 + $0x90] sm:$0xff] %v3894_v15  ;;  %v3899_v20 = vadd.f32 %v1516_v16, %v3786_v59  ;;  %v1986_v45 = vmul.f32 %v3894_v15, %v3894_v15 }
 0x335   : > { %v3118_v21 = vpop.f32.mrf.mxu1 }
 0x336   : > { %1596 = vst [vmem:[#allocation3 + $0x80] sm:$0xff] %v3899_v20  ;;  %v3903_v24 = vadd.f32 %v3118_v21, %v3786_v59  ;;  %v1984_v34 = vmul.f32 %v3899_v20, %v3899_v20  ;;  %v1943_v35 = vadd.f32 %v1942_v33, %v3899_v20 }
 0x337   : > { %v1519_v25 = vpop.f32.mrf.mxu1 }
 0x338   : > { %1599 = vst [vmem:[#allocation3 + $0x98] sm:$0xff] %v3903_v24  ;;  %v3910_v29 = vadd.f32 %v1519_v25, %v3786_v59  ;;  %v2015_v38 = vadd.f32 %v2014_v36, %v1984_v34  ;;  %v1987_v54 = vmul.f32 %v3903_v24, %v3903_v24 }
 0x33a   : > { %1597 = vst [vmem:[#allocation3 + $0x88] sm:$0xff] %v3910_v29  ;;  %v1985_v37 = vmul.f32 %v3910_v29, %v3910_v29  ;;  %v1944_v39 = vadd.f32 %v1943_v35, %v3910_v29 }
 0x33c   : > { %v2016_v41 = vadd.f32 %v2015_v38, %v1985_v37  ;;  %v1945_v46 = vadd.f32 %v1944_v39, %v3894_v15 }
 0x33e   : > { %v2017_v50 = vadd.f32 %v2016_v41, %v1986_v45  ;;  %v1946_v55 = vadd.f32 %v1945_v46, %v3903_v24 }
 0x340   : > { %v2018_v62 = vadd.f32 %v2017_v50, %v1987_v54  ;;  %v1927_v50 = vld [vmem:[#allocation5] sm:$0x1] }
 0x341   : > { %v3121_v40 = vpop.f32.mrf.mxu1 }
 0x342   : > { %v3923_v43 = vadd.f32 %v3121_v40, %v3786_v59 }
 0x343   : > { %v1532_v44 = vpop.f32.mrf.mxu1 }
 0x344   : > { %1602 = vst [vmem:[#allocation3 + $0xb0] sm:$0xff] %v3923_v43  ;;  %v3930_v48 = vadd.f32 %v1532_v44, %v3786_v59  ;;  %v1990_v10 = vmul.f32 %v3923_v43, %v3923_v43 }
 0x345   : > { %v3122_v49 = vpop.f32.mrf.mxu1 }
 0x346   : > { %1600 = vst [vmem:[#allocation3 + $0xa0] sm:$0xff] %v3930_v48  ;;  %v3934_v51 = vadd.f32 %v3122_v49, %v3786_v59  ;;  %v1988_v57 = vmul.f32 %v3930_v48, %v3930_v48  ;;  %v1947_v60 = vadd.f32 %v1946_v55, %v3930_v48 }
 0x347   : > { %v1535_v53 = vpop.f32.mrf.mxu1 }
 0x348   : > { %1603 = vst [vmem:[#allocation3 + $0xb8] sm:$0xff] %v3934_v51  ;;  %v3943_v58 = vadd.f32 %v1535_v53, %v3786_v59  ;;  %v2019_v4 = vadd.f32 %v2018_v62, %v1988_v57  ;;  %v1991_v21 = vmul.f32 %v3934_v51, %v3934_v51 }
 0x34a   : > { %1601 = vst [vmem:[#allocation3 + $0xa8] sm:$0xff] %v3943_v58  ;;  %v1989_v63 = vmul.f32 %v3943_v58, %v3943_v58  ;;  %v1948_v6 = vadd.f32 %v1947_v60, %v3943_v58  ;;  %v1967_v60 = vld [vmem:[#allocation6] sm:$0x1] }
 0x34c   : > { %v2020_v8 = vadd.f32 %v2019_v4, %v1989_v63  ;;  %v1949_v12 = vadd.f32 %v1948_v6, %v3923_v43 }
 0x34e   : > { %v2021_v16 = vadd.f32 %v2020_v8, %v1990_v10  ;;  %v1950_v25 = vadd.f32 %v1949_v12, %v3934_v51 }
 0x350   : > { %v2022_v32 = vadd.f32 %v2021_v16, %v1991_v21 }
 0x351   : > { %v3125_v14 = vpop.f32.mrf.mxu1 }
 0x352   : > { %v3954_v17 = vadd.f32 %v3125_v14, %v3786_v59 }
 0x353   : > { %v1548_v18 = vpop.f32.mrf.mxu1 }
 0x354   : > { %1606 = vst [vmem:[#allocation3 + $0xd0] sm:$0xff] %v3954_v17  ;;  %v3960_v22 = vadd.f32 %v1548_v18, %v3786_v59 }
 0x355   : > { %v3126_v27 = vpop.f32.mrf.mxu1 }
 0x356   : > { %1604 = vst [vmem:[#allocation3 + $0xc0] sm:$0xff] %v3960_v22  ;;  %v1951_v28 = vadd.f32 %v1950_v25, %v3960_v22  ;;  %v1992_v30 = vmul.f32 %v3960_v22, %v3960_v22  ;;  %v3968_v33 = vadd.f32 %v3126_v27, %v3786_v59 }
 0x357   : > { %v1551_v34 = vpop.f32.mrf.mxu1 }
 0x358   : > { %v1959_v35 = vrot.slane %v1951_v28, 4  ;;  %v2023_v36 = vadd.f32 %v2022_v32, %v1992_v30  ;;  %1607 = vst [vmem:[#allocation3 + $0xd8] sm:$0xff] %v3968_v33  ;;  %v3972_v37 = vadd.f32 %v1551_v34, %v3786_v59 }
 0x35a   : > { %v1960_v38 = vadd.f32 %v1959_v35, %v1951_v28  ;;  %v2031_v39 = vrot.slane %v2023_v36, 4  ;;  %1605 = vst [vmem:[#allocation3 + $0xc8] sm:$0xff] %v3972_v37  ;;  %v3530_v35 = vmov 1966171168  }
 0x35c   : > { %v1961_v40 = vrot.slane %v1960_v38, 2  ;;  %v2032_v41 = vadd.f32 %v2031_v39, %v2023_v36  ;;  %v2060_v36 = vunpack.c.l.s4 %v3530_v35 }
 0x35e   : > { %v1962_v44 = vadd.f32 %v1961_v40, %v1960_v38  ;;  %v2033_v45 = vrot.slane %v2032_v41, 2  ;;  %v2061_v38 = vunpack.c.0.s8 %v2060_v36  ;;  %v2041_v40 = vld [vmem:[%s3706_s30] sm:$0xf] }
 0x360   : > { %v1963_v46 = vrot.slane %v1962_v44, 1  ;;  %v2034_v49 = vadd.f32 %v2033_v45, %v2032_v41 }
 0x361   : > { %v3129_v53 = vpop.f32.mrf.mxu1 }
 0x362   : > { %v1964_v54 = vadd.f32 %v1963_v46, %v1962_v44  ;;  %v2035_v55 = vrot.slane %v2034_v49, 1  ;;  %v3976_v57 = vadd.f32 %v3129_v53, %v3786_v59  ;;  %v2064_v44 = vsub.s32 %v2061_v38, %v3740_v1 }
 0x363   : > { %v1564_v62 = vpop.f32.mrf.mxu1 }
 0x364   : > { %v1965_v63 = vadd.f32 %v1964_v54, %v1927_v50  ;;  %v2036_v4 = vadd.f32 %v2035_v55, %v2034_v49  ;;  %1610 = vst [vmem:[#allocation3 + $0xf0] sm:$0xff] %v3976_v57  ;;  %v3980_v6 = vadd.f32 %v1564_v62, %v3786_v59  ;;  %v2153_v54 = vsub.s32 3, %v3740_v1 }
 0x365   : > { %v3130_v8 = vpop.f32.mrf.mxu1 }
 0x366   : > { %1966 = vst [vmem:[#allocation5] sm:$0x1] %v1965_v63  ;;  %v2037_v10 = vadd.f32 %v2036_v4, %v1967_v60  ;;  %1608 = vst [vmem:[#allocation3 + $0xe0] sm:$0xff] %v3980_v6  ;;  %v3984_v12 = vadd.f32 %v3130_v8, %v3786_v59 }
 0x367   : > { %v1567_v14 = vpop.f32.mrf.mxu1 }
 0x368   : > { %2038 = vst [vmem:[#allocation6] sm:$0x1] %v2037_v10  ;;  %1611 = vst [vmem:[#allocation3 + $0xf8] sm:$0xff] %v3984_v12  ;;  %v1568_v16 = vadd.f32 %v1567_v14, %v3786_v59  ;;  %v2117_v59 = vsub.s32 2, %v3740_v1 }
 0x36a   : > { %1609 = vst [vmem:[#allocation3 + $0xe8] sm:$0xff] %v1568_v16 }
 0x36d   : > { %v2042_v18 = vld [vmem:[#allocation5] sm:$0x1] }
 0x36e   : > { %v2043_v21 = vmul.f32 0.005, %v2042_v18 }
 0x36f   : > { %v2044_v25 = vld [vmem:[#allocation6] sm:$0x1] }
 0x370   : > { %v2045_v27 = vmul.f32 0.005, %v2044_v25  ;;  %v2046_v28 = vmul.f32 %v2043_v21, %v2043_v21 }
 0x372   : > { %v2047_v30 = vsub.f32 %v2045_v27, %v2046_v28 }
 0x374   : > { %v2048_v32 = vmax.f32 %v2047_v30, 0.0 }
 0x376   : > { %v2049_v34 = vadd.f32 1e-05, %v2048_v32 }
 0x378   : > { %3298 = vrsqrt.f32 %v2049_v34 }
 0x385   : > { %v3299_v39 = vpop.eup %3298 }
 0x386   : > { %v2055_v41 = vrot.slane %v3299_v39, %v3743_v2 }
 0x388   : > { %v2057_v45 = vmul.f32 %v2055_v41, %v2041_v40 }
 0x38a   : > { %v2065_v46 = vrot.slane %v2057_v45, %v2064_v44  ;;  %v2118_v49 = vrot.slane %v2057_v45, %v2117_v59 }
 0x38c   : > { %v2072_v50 = vrot.slane %v2065_v46, %v2064_v44  ;;  %v2119_v55 = vmul.f32 %v2118_v49, %v3793_v5  ;;  %v2120_v60 = vmul.f32 %v2118_v49, %v3801_v3  ;;  %v2121_v62 = vmul.f32 %v2118_v49, %v3789_v61 }
 0x38d   : > { %v2122_v63 = vmul.f32 %v2118_v49, %v3797_v0  ;;  %v2123_v8 = vmul.f32 %v2118_v49, %v3809_v9  ;;  %v2124_v10 = vmul.f32 %v2118_v49, %v3817_v13  ;;  %v2125_v14 = vmul.f32 %v2118_v49, %v3805_v7 }
 0x38e   : > { %v2073_v53 = vcombine.high %v2072_v50, %v2072_v50  ;;  %v2126_v18 = vmul.f32 %v2118_v49, %v3813_v11  ;;  %v2127_v25 = vmul.f32 %v2118_v49, %v3834_v23  ;;  %v2128_v1 = vmul.f32 %v2118_v49, %v3847_v31 }
 0x38f   : > { %v2129_v5 = vmul.f32 %v2118_v49, %v3827_v19  ;;  %v2130_v61 = vmul.f32 %v2118_v49, %v3838_v26  ;;  %v2131_v0 = vmul.f32 %v2118_v49, %v3867_v47  ;;  %v2132_v9 = vmul.f32 %v2118_v49, %v3879_v56 }
 0x390   : > { %v2075_v4 = vmul.f32 %v2073_v53, %v2043_v21  ;;  %v2133_v13 = vmul.f32 %v2118_v49, %v3858_v42  ;;  %v2134_v7 = vmul.f32 %v2118_v49, %v3874_v52  ;;  %v2135_v11 = vmul.f32 %v2118_v49, %v3899_v20 }
 0x391   : > { %v2136_v23 = vmul.f32 %v2118_v49, %v3910_v29  ;;  %v2137_v31 = vmul.f32 %v2118_v49, %v3894_v15  ;;  %v2138_v19 = vmul.f32 %v2118_v49, %v3903_v24  ;;  %v2140_v26 = vmul.f32 %v2118_v49, %v3943_v58 }
 0x392   : > { %v2080_v3 = vrot.slane %v2075_v4, %v3743_v2  ;;  %v2139_v2 = vmul.f32 %v2118_v49, %v3930_v48  ;;  %v2141_v47 = vmul.f32 %v2118_v49, %v3923_v43  ;;  %v2142_v56 = vmul.f32 %v2118_v49, %v3934_v51 }
 0x393   : > { %v2143_v42 = vmul.f32 %v2118_v49, %v3960_v22  ;;  %v2145_v52 = vmul.f32 %v2118_v49, %v3954_v17  ;;  %v2146_v29 = vmul.f32 %v2118_v49, %v3968_v33  ;;  %v2144_v27 = vmul.f32 %v2118_v49, %v3972_v37 }
 0x394   : > { %v2082_v21 = vsub.f32 %v2041_v40, %v2080_v3  ;;  %v2149_v15 = vmul.f32 %v2118_v49, %v3976_v57  ;;  %v2147_v24 = vmul.f32 %v2118_v49, %v3980_v6  ;;  %v2150_v48 = vmul.f32 %v2118_v49, %v3984_v12 }
 0x395   : > { %v2148_v58 = vmul.f32 %v2118_v49, %v1568_v16 }
 0x396   : > { %v2154_v20 = vrot.slane %v2082_v21, %v2153_v54 }
 0x398   : > { %v4025_v28 = vadd.f32 %v2154_v20, %v2119_v55  ;;  %v4027_v43 = vadd.f32 %v2154_v20, %v2120_v60  ;;  %v4029_v51 = vadd.f32 %v2154_v20, %v2121_v62  ;;  %v4031_v22 = vadd.f32 %v2154_v20, %v2122_v63 }
 0x399   : > { %v4033_v17 = vadd.f32 %v2154_v20, %v2123_v8  ;;  %v4035_v33 = vadd.f32 %v2154_v20, %v2124_v10  ;;  %v4037_v37 = vadd.f32 %v2154_v20, %v2125_v14  ;;  %v4039_v57 = vadd.f32 %v2154_v20, %v2126_v18 }
 0x39a   : > { %v4041_v6 = vadd.f32 %v2154_v20, %v2127_v25  ;;  %v4043_v12 = vadd.f32 %v2154_v20, %v2128_v1  ;;  %v4045_v16 = vadd.f32 %v2154_v20, %v2129_v5  ;;  %v4047_v30 = vadd.f32 %v2154_v20, %v2130_v61 }
 0x39b   : > { %v4049_v32 = vadd.f32 %v2154_v20, %v2131_v0  ;;  %v4051_v34 = vadd.f32 %v2154_v20, %v2132_v9  ;;  %v4053_v35 = vadd.f32 %v2154_v20, %v2133_v13  ;;  %v4055_v36 = vadd.f32 %v2154_v20, %v2134_v7  ;;  %2190 = sbr.rel (%p2630_p6) target bundleno = 944 (0x3b0), region = 92 }
 0x39c   : > { %v4057_v38 = vadd.f32 %v2154_v20, %v2135_v11  ;;  %v4059_v39 = vadd.f32 %v2154_v20, %v2136_v23  ;;  %v4061_v40 = vadd.f32 %v2154_v20, %v2137_v31  ;;  %v4063_v41 = vadd.f32 %v2154_v20, %v2138_v19 }
 0x39d   : > { %v4065_v44 = vadd.f32 %v2154_v20, %v2139_v2  ;;  %v4067_v59 = vadd.f32 %v2154_v20, %v2140_v26  ;;  %v4069_v45 = vadd.f32 %v2154_v20, %v2141_v47  ;;  %v4071_v46 = vadd.f32 %v2154_v20, %v2142_v56 }
 0x39e   : > { %v4073_v49 = vadd.f32 %v2154_v20, %v2143_v42  ;;  %v4075_v50 = vadd.f32 %v2154_v20, %v2145_v52  ;;  %v4077_v53 = vadd.f32 %v2154_v20, %v2146_v29  ;;  %v4079_v54 = vadd.f32 %v2154_v20, %v2144_v27 }
 0x39f   : > { %v4081_v55 = vadd.f32 %v2154_v20, %v2149_v15  ;;  %v4083_v60 = vadd.f32 %v2154_v20, %v2147_v24  ;;  %v4085_v62 = vadd.f32 %v2154_v20, %v2150_v48  ;;  %v4087_v63 = vadd.f32 %v2154_v20, %v2148_v58 }
 0x3a0   : > { %v2191_v4 = vmax.f32 %v4025_v28, 0.0  ;;  %v2192_v8 = vmax.f32 %v4027_v43, 0.0  ;;  %v2193_v10 = vmax.f32 %v4029_v51, 0.0  ;;  %v2194_v14 = vmax.f32 %v4031_v22, 0.0 }
 0x3a1   : > { %v2195_v18 = vmax.f32 %v4033_v17, 0.0  ;;  %v2196_v25 = vmax.f32 %v4035_v33, 0.0  ;;  %v2197_v1 = vmax.f32 %v4037_v37, 0.0  ;;  %v2198_v5 = vmax.f32 %v4039_v57, 0.0 }
 0x3a2   : > { %v2768_v3 = vpack.c.bf16 %v2192_v8, %v2191_v4  ;;  %v2773_v61 = vpack.c.bf16 %v2194_v14, %v2193_v10  ;;  %v2199_v0 = vmax.f32 %v4041_v6, 0.0  ;;  %v2200_v9 = vmax.f32 %v4043_v12, 0.0 }
 0x3a3   : > { %v2778_v13 = vpack.c.bf16 %v2196_v25, %v2195_v18  ;;  %v2783_v7 = vpack.c.bf16 %v2198_v5, %v2197_v1  ;;  %v2201_v11 = vmax.f32 %v4045_v16, 0.0  ;;  %v2202_v23 = vmax.f32 %v4047_v30, 0.0 }
 0x3a4   : > { %2769 = vst [vmem:[#allocation2] sm:$0xff] %v2768_v3   ;;  %2860 = vst [vmem:[#allocation2 + $0x8] sm:$0xff] %v2773_v61   ;;  %v2788_v21 = vpack.c.bf16 %v2200_v9, %v2199_v0  ;;  %v2203_v31 = vmax.f32 %v4049_v32, 0.0  ;;  %v2204_v19 = vmax.f32 %v4051_v34, 0.0  ;;  %v2205_v2 = vmax.f32 %v4053_v35, 0.0 }
 0x3a5   : > { %2861 = vst [vmem:[#allocation2 + $0x10] sm:$0xff] %v2778_v13   ;;  %2862 = vst [vmem:[#allocation2 + $0x18] sm:$0xff] %v2783_v7   ;;  %v2793_v26 = vpack.c.bf16 %v2202_v23, %v2201_v11  ;;  %v2206_v47 = vmax.f32 %v4055_v36, 0.0  ;;  %v2207_v56 = vmax.f32 %v4057_v38, 0.0  ;;  %v2208_v42 = vmax.f32 %v4059_v39, 0.0 }
 0x3a6   : > { %2863 = vst [vmem:[#allocation2 + $0x20] sm:$0xff] %v2788_v21   ;;  %v2798_v52 = vpack.c.bf16 %v2204_v19, %v2203_v31  ;;  %v2209_v20 = vmax.f32 %v4061_v40, 0.0  ;;  %v2210_v29 = vmax.f32 %v4063_v41, 0.0  ;;  %v2211_v27 = vmax.f32 %v4065_v44, 0.0 }
 0x3a7   : > { %2864 = vst [vmem:[#allocation2 + $0x28] sm:$0xff] %v2793_v26   ;;  %v2803_v15 = vpack.c.bf16 %v2206_v47, %v2205_v2  ;;  %v2808_v24 = vpack.c.bf16 %v2208_v42, %v2207_v56  ;;  %v2212_v48 = vmax.f32 %v4067_v59, 0.0  ;;  %v2213_v58 = vmax.f32 %v4069_v45, 0.0 }
 0x3a8   : > { %2865 = vst [vmem:[#allocation2 + $0x30] sm:$0xff] %v2798_v52   ;;  %v2813_v4 = vpack.c.bf16 %v2210_v29, %v2209_v20  ;;  %v2214_v8 = vmax.f32 %v4071_v46, 0.0  ;;  %v2215_v10 = vmax.f32 %v4073_v49, 0.0  ;;  %v2216_v14 = vmax.f32 %v4079_v54, 0.0 }
 0x3a9   : > { %2866 = vst [vmem:[#allocation2 + $0x38] sm:$0xff] %v2803_v15   ;;  %2867 = vst [vmem:[#allocation2 + $0x40] sm:$0xff] %v2808_v24   ;;  %v2818_v18 = vpack.c.bf16 %v2212_v48, %v2211_v27  ;;  %v2217_v25 = vmax.f32 %v4075_v50, 0.0  ;;  %v2218_v1 = vmax.f32 %v4077_v53, 0.0  ;;  %v2219_v5 = vmax.f32 %v4083_v60, 0.0 }
 0x3aa   : > { %2868 = vst [vmem:[#allocation2 + $0x48] sm:$0xff] %v2813_v4   ;;  %v2823_v3 = vpack.c.bf16 %v2214_v8, %v2213_v58  ;;  %v2828_v61 = vpack.c.bf16 %v2216_v14, %v2215_v10  ;;  %v2220_v0 = vmax.f32 %v4087_v63, 0.0  ;;  %v2221_v9 = vmax.f32 %v4081_v55, 0.0 }
 0x3ab   : > { %2869 = vst [vmem:[#allocation2 + $0x50] sm:$0xff] %v2818_v18   ;;  %v2833_v13 = vpack.c.bf16 %v2218_v1, %v2217_v25  ;;  %v2222_v7 = vmax.f32 %v4085_v62, 0.0 }
 0x3ac   : > { %2870 = vst [vmem:[#allocation2 + $0x58] sm:$0xff] %v2823_v3   ;;  %2871 = vst [vmem:[#allocation2 + $0x60] sm:$0xff] %v2828_v61   ;;  %v2838_v11 = vpack.c.bf16 %v2220_v0, %v2219_v5 }
 0x3ad   : > { %2872 = vst [vmem:[#allocation2 + $0x68] sm:$0xff] %v2833_v13   ;;  %v2843_v23 = vpack.c.bf16 %v2222_v7, %v2221_v9 }
 0x3ae   : > { %2873 = vst [vmem:[#allocation2 + $0x70] sm:$0xff] %v2838_v11  }
 0x3af   : > { %2874 = vst [vmem:[#allocation2 + $0x78] sm:$0xff] %v2843_v23  }
 0x3b0 PF: > { %p2663_p5 = scmp.ne.s32.totalorder %s3510_s21, 2 }
 0x3b1   : > { %s3531_s21 = smov (!%p2663_p5), [#allocation3]  }
 0x3b2   : > { %2386 = sbr.rel (%p2663_p5) target bundleno = 971 (0x3cb), region = 96  ;;  %s2426_s7 = sshll.u32 (!%p2663_p5), %s3531_s21, 4  ;;  %s2427_s7 = int_to_ptr.vmem [resolvable:$true] %s2426_s7 }
 0x3b3   : > { %s3434_s10 = scalar_lea.vmem (!%p2663_p5), %s2427_s7, 4096  ;;  %p3439_p11 = scmp.lt.s32.totalorder (!%p2663_p5), %s2427_s7, %s2427_s7 }
 0x3b4   : > { %p3435_p10 = scmp.ne.s32.totalorder (!%p2663_p5), %s2427_s7, %s3434_s10  ;;  %p3440_p3 = scmp.lt.s32.totalorder (!%p2663_p5), %s3434_s10, %s3434_s10 }
 0x3b6   : > { %p3441_p8 = por (!%p2663_p5), %p3440_p3, %p3439_p11 }
 0x3b7   : > { %2387 = vst [vmem:[#allocation3] sm:$0xff] %v4025_v28  ;;  %2388 = vst [vmem:[#allocation3 + $0x8] sm:$0xff] %v4027_v43 }
 0x3b8   : > { %2389 = vst [vmem:[#allocation3 + $0x10] sm:$0xff] %v4029_v51  ;;  %2390 = vst [vmem:[#allocation3 + $0x18] sm:$0xff] %v4031_v22  ;;  %p3442_p7 = pnand %p3441_p8, %p3435_p10 }
 0x3b9   : > { %2391 = vst [vmem:[#allocation3 + $0x20] sm:$0xff] %v4033_v17  ;;  %2392 = vst [vmem:[#allocation3 + $0x28] sm:$0xff] %v4035_v33 }
 0x3ba   : > { %2393 = vst [vmem:[#allocation3 + $0x30] sm:$0xff] %v4037_v37  ;;  %2394 = vst [vmem:[#allocation3 + $0x38] sm:$0xff] %v4039_v57 }
 0x3bb   : > { %2395 = vst [vmem:[#allocation3 + $0x40] sm:$0xff] %v4041_v6  ;;  %2396 = vst [vmem:[#allocation3 + $0x48] sm:$0xff] %v4043_v12 }
 0x3bc   : > { %2397 = vst [vmem:[#allocation3 + $0x50] sm:$0xff] %v4045_v16  ;;  %2398 = vst [vmem:[#allocation3 + $0x58] sm:$0xff] %v4047_v30 }
 0x3bd   : > { %2399 = vst [vmem:[#allocation3 + $0x60] sm:$0xff] %v4049_v32  ;;  %2400 = vst [vmem:[#allocation3 + $0x68] sm:$0xff] %v4051_v34 }
 0x3be   : > { %2401 = vst [vmem:[#allocation3 + $0x70] sm:$0xff] %v4053_v35  ;;  %2402 = vst [vmem:[#allocation3 + $0x78] sm:$0xff] %v4055_v36 }
 0x3bf   : > { %2403 = vst [vmem:[#allocation3 + $0x80] sm:$0xff] %v4057_v38  ;;  %2404 = vst [vmem:[#allocation3 + $0x88] sm:$0xff] %v4059_v39 }
 0x3c0   : > { %2405 = vst [vmem:[#allocation3 + $0x90] sm:$0xff] %v4061_v40  ;;  %2406 = vst [vmem:[#allocation3 + $0x98] sm:$0xff] %v4063_v41 }
 0x3c1   : > { %2407 = vst [vmem:[#allocation3 + $0xa0] sm:$0xff] %v4065_v44  ;;  %2408 = vst [vmem:[#allocation3 + $0xa8] sm:$0xff] %v4067_v59 }
 0x3c2   : > { %2409 = vst [vmem:[#allocation3 + $0xb0] sm:$0xff] %v4069_v45  ;;  %2410 = vst [vmem:[#allocation3 + $0xb8] sm:$0xff] %v4071_v46 }
 0x3c3   : > { %2411 = vst [vmem:[#allocation3 + $0xc0] sm:$0xff] %v4073_v49  ;;  %2412 = vst [vmem:[#allocation3 + $0xc8] sm:$0xff] %v4079_v54 }
 0x3c4   : > { %2413 = vst [vmem:[#allocation3 + $0xd0] sm:$0xff] %v4075_v50  ;;  %2414 = vst [vmem:[#allocation3 + $0xd8] sm:$0xff] %v4077_v53 }
 0x3c5   : > { %2415 = vst [vmem:[#allocation3 + $0xe0] sm:$0xff] %v4083_v60  ;;  %2416 = vst [vmem:[#allocation3 + $0xe8] sm:$0xff] %v4087_v63 }
 0x3c6   : > { %2417 = vst [vmem:[#allocation3 + $0xf0] sm:$0xff] %v4081_v55  ;;  %2418 = vst [vmem:[#allocation3 + $0xf8] sm:$0xff] %v4085_v62 }
 0x3c7   : > { %3445 = shalt.err (!%p3442_p7)  }
 0x3c8   : > { %2429 = dma.vmem_to_hbm [thread:$0]  %s2427_s7, 4096, %s4181_s5, [#allocation7] }
 0x3c9   : > { %3494 = dma.done.wait [#allocation7], 4096 }
 0x3ca   : > { %3495 = vsyncadd [#allocation7], 4294963200 }
 0x3cb PF: > { %s22_s23 = sadd.s32 1, %s3518_s23   ;;  %s4195_s18 = smov %s3502_s19 }
 0x3cc   : > { %p19_p4 = scmp.ge.s32.totalorder %s22_s23, 4   ;;  %s4196_s19 = smov %s3506_s20 }
 0x3cd   : > { %s4197_s20 = smov %s3608_s29  ;;  %s4198_s21 = smov %s3514_s22 }
 0x3ce   : > { %s4199_s22 = smov %s4201_s24  ;;  %21 = sbr.rel (!%p19_p4) target bundleno = 10 (0xa), region = 141 }
 0x3d3   :  { %2433 = vsyncpa [#allocation9], 1 }
 0x3d4   :  { %2435 = vsyncpa [#allocation9 + $0x1], 1 }
 0x3d5   :  { %2436 = vsyncpa [#allocation11], 1 }
 0x3d6   :  { %2438 = vsyncpa [#allocation11 + $0x1], 1 }
 0x3d7   :  { %2439 = vsyncpa [#allocation14], 1 }
 0x3d8   :  { %2441 = vsyncpa [#allocation14 + $0x1], 1 }
 0x3d9   :  { %2442 = vsyncmov [#allocation7] }
 0x3dc   :  { %s2443_s13 = vpop.sfrf %2442 }
 0x3dd   :  { %p2664_p12 = scmp.ne.s32.totalorder %s2443_s13, 0 }
 0x3df   :  { %2447 = shalt.err (%p2664_p12)  }

</bundles_post_ra>
